<compile_context>
chip_gen: v5e
topology: v5e:2x2
jax: 0.10.0
libtpu: 0.0.40
codegen_flags: <defaults>
</compile_context>

<pallas_src>
import functools

import jax
import jax.numpy as jnp
from jax.experimental import pallas as pl
from jax.experimental.pallas import tpu as pltpu


# ----------------------------------------------------------------------------
# Fused encoder kernel (one grid step == one batch element, all weights in VMEM)
# ----------------------------------------------------------------------------
def _encoder_kernel(
    x_ref, wqkv_ref, bqkv_ref, wo_ref, bo_ref, ln1_g_ref, ln1_b_ref,
    w1_ref, b1_ref, w2_ref, b2_ref, ln2_g_ref, ln2_b_ref,
    o_ref, *, num_head, eps,
):
    x = x_ref[0].astype(jnp.float32)          # [S, D]
    s, d = x.shape
    h = num_head
    dh = d // h

    def linear(inp, w_ref, b_ref):
        # y = inp @ W.T + b, with W kept in torch [out, in] layout; the MXU
        # handles the transposed-B contraction natively (no transpose op).
        y = jax.lax.dot_general(
            inp, w_ref[...],
            dimension_numbers=(((1,), (1,)), ((), ())),
            preferred_element_type=jnp.float32)
        return y + b_ref[...]

    def layer_norm(y, g_ref, b_ref):
        m = jnp.mean(y, axis=-1, keepdims=True)
        v = jnp.mean((y - m) ** 2, axis=-1, keepdims=True)   # biased, like torch LN
        return (y - m) * jax.lax.rsqrt(v + eps) * g_ref[...] + b_ref[...]

    # ---- multi-head attention -------------------------------------------
    # Fused Q/K/V projection, computed directly in transposed layout
    # qkv_t[fo, n] = sum_i Wqkv[fo, i] * x[n, i]  -> [3D, S]
    qkv_t = jax.lax.dot_general(
        wqkv_ref[...], x,
        dimension_numbers=(((1,), (1,)), ((), ())),
        preferred_element_type=jnp.float32) + bqkv_ref[...]

    # Reproduce torch's raw .view(batch*num_head, -1, dim_head): with
    # dim_model == num_head**2 and seq == num_head each token attends over its
    # own [num_head, dim_head] feature matrix.  In transposed layout the
    # reshape only splits the (sublane-major) feature axis -> layout no-op.
    scale = dh ** -0.5
    q3 = qkv_t[0 * d:1 * d].reshape(h, dh, s) * scale   # [l, e, n]
    k3 = qkv_t[1 * d:2 * d].reshape(h, dh, s)           # [m, e, n]
    v3 = qkv_t[2 * d:3 * d].reshape(h, dh, s)           # [m, f, n]

    # scores[l, m, n] = scale * sum_e q[n, l*dh+e] * k[n, m*dh+e]
    sc = q3[:, 0, :][:, None, :] * k3[:, 0, :][None, :, :]
    for e in range(1, dh):
        sc = sc + q3[:, e, :][:, None, :] * k3[:, e, :][None, :, :]

    sc = sc - jnp.max(sc, axis=1, keepdims=True)        # stable softmax over m
    p = jnp.exp(sc)
    p = p / jnp.sum(p, axis=1, keepdims=True)

    # ctx[l, f, n] = sum_m p[l, m, n] * v[n, m*dh+f]
    ctx = p[:, 0, :][:, None, :] * v3[0][None, :, :]
    for m in range(1, h):
        ctx = ctx + p[:, m, :][:, None, :] * v3[m][None, :, :]

    # context.view(batch, -1, dim_head*num_head): token n feature (l*dh+f)
    ctx2d = ctx.reshape(d, s).T                          # [S, D]

    attn_out = linear(ctx2d, wo_ref, bo_ref)
    out1 = layer_norm(attn_out + x, ln1_g_ref, ln1_b_ref)   # dropout(p=0.0) = id

    # ---- position-wise feed-forward (hidden stays on-chip) ---------------
    hid = jnp.maximum(linear(out1, w1_ref, b1_ref), 0.0)
    ff = linear(hid, w2_ref, b2_ref)
    out2 = layer_norm(ff + out1, ln2_g_ref, ln2_b_ref)       # dropout(p=0.0) = id

    o_ref[0] = out2.astype(o_ref.dtype)


# ----------------------------------------------------------------------------
# Wrapper: one pallas_call for the whole encoder
# ----------------------------------------------------------------------------
def encoder_forward(x, params, num_head, eps=1e-5):
    b, s, d = x.shape
    h = num_head
    assert d % h == 0
    assert d == h * h, "module only well-formed if dim_model == num_head**2"
    assert s == h, "fused kernel specialized to seq == num_head (per-token view)"

    hidden = params["W1"].shape[0]

    # Fuse QKV weights/biases once (torch [out, in] layout preserved).
    wqkv = jnp.concatenate([params["Wq"], params["Wk"], params["Wv"]], axis=0)   # [3D, D]
    bqkv = jnp.concatenate([params["bq"], params["bk"], params["bv"]]).reshape(3 * d, 1)

    operands = (
        x,
        wqkv, bqkv,
        params["Wo"], params["bo"].reshape(1, d),
        params["ln1_g"].reshape(1, d), params["ln1_b"].reshape(1, d),
        params["W1"], params["b1"].reshape(1, hidden),
        params["W2"], params["b2"].reshape(1, d),
        params["ln2_g"].reshape(1, d), params["ln2_b"].reshape(1, d),
    )

    in_specs = [pl.BlockSpec((1, s, d), lambda i: (i, 0, 0))]
    in_specs += [pl.BlockSpec(a.shape, lambda i: (0, 0)) for a in operands[1:]]

    kernel = functools.partial(_encoder_kernel, num_head=num_head, eps=eps)
    return pl.pallas_call(
        kernel,
        out_shape=jax.ShapeDtypeStruct((b, s, d), x.dtype),
        grid=(b,),
        in_specs=in_specs,
        out_specs=pl.BlockSpec((1, s, d), lambda i: (i, 0, 0)),
        compiler_params=pltpu.CompilerParams(dimension_semantics=("parallel",)),
    )(*operands)


# ----------------------------------------------------------------------------
# Pure-JAX reference (for correctness check) — mirrors the PyTorch module
# ----------------------------------------------------------------------------
def encoder_reference(x, p, num_head):
    def lin(y, w, bb):
        return y @ w.T + bb

    def ln(y, g, bb, eps=1e-5):
        m = jnp.mean(y, axis=-1, keepdims=True)
        v = jnp.mean((y - m) ** 2, axis=-1, keepdims=True)
        return (y - m) / jnp.sqrt(v + eps) * g + bb

    b, s, d = x.shape
    h = num_head
    dh = d // h
    q = lin(x, p["Wq"], p["bq"]).reshape(b * h, -1, dh)
    k = lin(x, p["Wk"], p["bk"]).reshape(b * h, -1, dh)
    v = lin(x, p["Wv"], p["bv"]).reshape(b * h, -1, dh)
    s_ = jnp.einsum("bqd,bkd->bqk", q, k) * (dh ** -0.5)
    attn = jax.nn.softmax(s_, axis=-1)
    ctx = jnp.einsum("bqk,bkd->bqd", attn, v).reshape(b, -1, dh * h)
    out = ln(lin(ctx, p["Wo"], p["bo"]) + x, p["ln1_g"], p["ln1_b"])
    ff = lin(jnp.maximum(lin(out, p["W1"], p["b1"]), 0.0), p["W2"], p["b2"])
    return ln(ff + out, p["ln2_g"], p["ln2_b"])


# ----------------------------------------------------------------------------
# Parameter construction (deterministic, torch-Linear-style layout [out, in])
# ----------------------------------------------------------------------------
def make_params(key, dim_model, num_head, hidden):
    assert dim_model % num_head == 0
    assert dim_model == num_head * num_head, "module only well-formed if dim_model == num_head**2"

    def init_linear(k, out_f, in_f):
        kw, kb = jax.random.split(k)
        bound = 1.0 / (in_f ** 0.5)
        w = jax.random.uniform(kw, (out_f, in_f), jnp.float32, -bound, bound)
        bb = jax.random.uniform(kb, (out_f,), jnp.float32, -bound, bound)
        return w, bb

    keys = jax.random.split(key, 6)
    params = {}
    params["Wq"], params["bq"] = init_linear(keys[0], num_head * num_head, dim_model)
    params["Wk"], params["bk"] = init_linear(keys[1], num_head * num_head, dim_model)
    params["Wv"], params["bv"] = init_linear(keys[2], num_head * num_head, dim_model)
    params["Wo"], params["bo"] = init_linear(keys[3], dim_model, dim_model)
    params["W1"], params["b1"] = init_linear(keys[4], hidden, dim_model)
    params["W2"], params["b2"] = init_linear(keys[5], dim_model, hidden)
    params["ln1_g"] = jnp.ones((dim_model,), jnp.float32)
    params["ln1_b"] = jnp.zeros((dim_model,), jnp.float32)
    params["ln2_g"] = jnp.ones((dim_model,), jnp.float32)
    params["ln2_b"] = jnp.zeros((dim_model,), jnp.float32)
    return params


if __name__ == "__main__":
    # Small config consistent with the module's constraints (dim_model = num_head**2)
    batch, seq = 2, 8
    num_head = 8
    dim_model = num_head * num_head      # 64
    hidden = 32
    dropout = 0.0                        # nn.Dropout(0.0) -> identity

    root = jax.random.PRNGKey(0)
    k_x, k_p = jax.random.split(root)
    x = jax.random.normal(k_x, (batch, seq, dim_model), jnp.float32)
    params = make_params(k_p, dim_model, num_head, hidden)

    fwd = jax.jit(functools.partial(encoder_forward, num_head=num_head))
    out = jax.block_until_ready(fwd(x, params))

    ref = encoder_reference(x, params, num_head)
    assert out.shape == (batch, seq, dim_model)
    assert jnp.allclose(out, ref, atol=1e-4, rtol=1e-4), "mismatch vs reference"

    print("KERNEL_OK")
</pallas_src>

<mosaic_0001>
module attributes {stable_mosaic.version = 11 : i64} {
  func.func @_encoder_kernel(%arg0: i32, %arg1: memref<1x8x64xf32, #tpu.memory_space<vmem>>, %arg2: memref<192x64xf32, #tpu.memory_space<vmem>>, %arg3: memref<192x1xf32, #tpu.memory_space<vmem>>, %arg4: memref<64x64xf32, #tpu.memory_space<vmem>>, %arg5: memref<1x64xf32, #tpu.memory_space<vmem>>, %arg6: memref<1x64xf32, #tpu.memory_space<vmem>>, %arg7: memref<1x64xf32, #tpu.memory_space<vmem>>, %arg8: memref<32x64xf32, #tpu.memory_space<vmem>>, %arg9: memref<1x32xf32, #tpu.memory_space<vmem>>, %arg10: memref<64x32xf32, #tpu.memory_space<vmem>>, %arg11: memref<1x64xf32, #tpu.memory_space<vmem>>, %arg12: memref<1x64xf32, #tpu.memory_space<vmem>>, %arg13: memref<1x64xf32, #tpu.memory_space<vmem>>, %arg14: memref<1x8x64xf32, #tpu.memory_space<vmem>>) attributes {dimension_semantics = [#tpu.dimension_semantics<parallel>], iteration_bounds = array<i64: 2>, scalar_prefetch = 0 : i64, scratch_operands = 0 : i64, tpu.core_type = #tpu.core_type<tc>, window_params = [{transform_indices = @transform_0, window_bounds = array<i64: 1, 8, 64>}, {pipeline_mode = #tpu.pipeline_mode<synchronous>, transform_indices = @transform_1, window_bounds = array<i64: 192, 64>}, {pipeline_mode = #tpu.pipeline_mode<synchronous>, transform_indices = @transform_2, window_bounds = array<i64: 192, 1>}, {pipeline_mode = #tpu.pipeline_mode<synchronous>, transform_indices = @transform_3, window_bounds = array<i64: 64, 64>}, {pipeline_mode = #tpu.pipeline_mode<synchronous>, transform_indices = @transform_4, window_bounds = array<i64: 1, 64>}, {pipeline_mode = #tpu.pipeline_mode<synchronous>, transform_indices = @transform_5, window_bounds = array<i64: 1, 64>}, {pipeline_mode = #tpu.pipeline_mode<synchronous>, transform_indices = @transform_6, window_bounds = array<i64: 1, 64>}, {pipeline_mode = #tpu.pipeline_mode<synchronous>, transform_indices = @transform_7, window_bounds = array<i64: 32, 64>}, {pipeline_mode = #tpu.pipeline_mode<synchronous>, transform_indices = @transform_8, window_bounds = array<i64: 1, 32>}, {pipeline_mode = #tpu.pipeline_mode<synchronous>, transform_indices = @transform_9, window_bounds = array<i64: 64, 32>}, {pipeline_mode = #tpu.pipeline_mode<synchronous>, transform_indices = @transform_10, window_bounds = array<i64: 1, 64>}, {pipeline_mode = #tpu.pipeline_mode<synchronous>, transform_indices = @transform_11, window_bounds = array<i64: 1, 64>}, {pipeline_mode = #tpu.pipeline_mode<synchronous>, transform_indices = @transform_12, window_bounds = array<i64: 1, 64>}, {transform_indices = @transform_13, window_bounds = array<i64: 1, 8, 64>}]} {
    %c0 = arith.constant 0 : index
    %c0_0 = arith.constant 0 : index
    %c0_1 = arith.constant 0 : index
    %0 = vector.load %arg1[%c0, %c0_0, %c0_1] : memref<1x8x64xf32, #tpu.memory_space<vmem>>, vector<1x8x64xf32>
    %1 = vector.shape_cast %0 : vector<1x8x64xf32> to vector<8x64xf32>
    %c0_2 = arith.constant 0 : index
    %c0_3 = arith.constant 0 : index
    %2 = vector.load %arg2[%c0_2, %c0_3] : memref<192x64xf32, #tpu.memory_space<vmem>>, vector<192x64xf32>
    %cst = arith.constant dense<0.000000e+00> : vector<192x8xf32>
    %3 = tpu.matmul %2, %1, %cst {dimension_numbers = #tpu.dot_dimension_numbers<[1], [1], [0], [0], [0, 0, 1, 0], [], []>} : vector<192x64xf32>, vector<8x64xf32>, vector<192x8xf32> -> vector<192x8xf32>
    %c0_4 = arith.constant 0 : index
    %c0_5 = arith.constant 0 : index
    %4 = vector.load %arg3[%c0_4, %c0_5] : memref<192x1xf32, #tpu.memory_space<vmem>>, vector<192x1xf32>
    %5 = vector.broadcast %4 : vector<192x1xf32> to vector<192x8xf32>
    %6 = arith.addf %3, %5 : vector<192x8xf32>
    %7 = vector.extract_strided_slice %6 {offsets = [0, 0], sizes = [64, 8], strides = [1, 1]} : vector<192x8xf32> to vector<64x8xf32>
    %8 = vector.shape_cast %7 : vector<64x8xf32> to vector<8x8x8xf32>
    %cst_6 = arith.constant 0.353553385 : f32
    %9 = vector.broadcast %cst_6 : f32 to vector<8x8x8xf32>
    %10 = arith.mulf %8, %9 : vector<8x8x8xf32>
    %11 = vector.extract_strided_slice %6 {offsets = [64, 0], sizes = [64, 8], strides = [1, 1]} : vector<192x8xf32> to vector<64x8xf32>
    %12 = vector.shape_cast %11 : vector<64x8xf32> to vector<8x8x8xf32>
    %13 = vector.extract_strided_slice %6 {offsets = [128, 0], sizes = [64, 8], strides = [1, 1]} : vector<192x8xf32> to vector<64x8xf32>
    %14 = vector.shape_cast %13 : vector<64x8xf32> to vector<8x8x8xf32>
    %15 = vector.extract_strided_slice %10 {offsets = [0, 0, 0], sizes = [8, 1, 8], strides = [1, 1, 1]} : vector<8x8x8xf32> to vector<8x1x8xf32>
    %16 = vector.shape_cast %15 : vector<8x1x8xf32> to vector<8x8xf32>
    %17 = vector.shape_cast %16 : vector<8x8xf32> to vector<8x1x8xf32>
    %18 = vector.extract_strided_slice %12 {offsets = [0, 0, 0], sizes = [8, 1, 8], strides = [1, 1, 1]} : vector<8x8x8xf32> to vector<8x1x8xf32>
    %19 = vector.shape_cast %18 : vector<8x1x8xf32> to vector<8x8xf32>
    %20 = vector.shape_cast %19 : vector<8x8xf32> to vector<1x8x8xf32>
    %21 = vector.broadcast %17 : vector<8x1x8xf32> to vector<8x8x8xf32>
    %22 = vector.broadcast %20 : vector<1x8x8xf32> to vector<8x8x8xf32>
    %23 = arith.mulf %21, %22 : vector<8x8x8xf32>
    %24 = vector.extract_strided_slice %10 {offsets = [0, 1, 0], sizes = [8, 1, 8], strides = [1, 1, 1]} : vector<8x8x8xf32> to vector<8x1x8xf32>
    %25 = vector.shape_cast %24 : vector<8x1x8xf32> to vector<8x8xf32>
    %26 = vector.shape_cast %25 : vector<8x8xf32> to vector<8x1x8xf32>
    %27 = vector.extract_strided_slice %12 {offsets = [0, 1, 0], sizes = [8, 1, 8], strides = [1, 1, 1]} : vector<8x8x8xf32> to vector<8x1x8xf32>
    %28 = vector.shape_cast %27 : vector<8x1x8xf32> to vector<8x8xf32>
    %29 = vector.shape_cast %28 : vector<8x8xf32> to vector<1x8x8xf32>
    %30 = vector.broadcast %26 : vector<8x1x8xf32> to vector<8x8x8xf32>
    %31 = vector.broadcast %29 : vector<1x8x8xf32> to vector<8x8x8xf32>
    %32 = arith.mulf %30, %31 : vector<8x8x8xf32>
    %33 = arith.addf %23, %32 : vector<8x8x8xf32>
    %34 = vector.extract_strided_slice %10 {offsets = [0, 2, 0], sizes = [8, 1, 8], strides = [1, 1, 1]} : vector<8x8x8xf32> to vector<8x1x8xf32>
    %35 = vector.shape_cast %34 : vector<8x1x8xf32> to vector<8x8xf32>
    %36 = vector.shape_cast %35 : vector<8x8xf32> to vector<8x1x8xf32>
    %37 = vector.extract_strided_slice %12 {offsets = [0, 2, 0], sizes = [8, 1, 8], strides = [1, 1, 1]} : vector<8x8x8xf32> to vector<8x1x8xf32>
    %38 = vector.shape_cast %37 : vector<8x1x8xf32> to vector<8x8xf32>
    %39 = vector.shape_cast %38 : vector<8x8xf32> to vector<1x8x8xf32>
    %40 = vector.broadcast %36 : vector<8x1x8xf32> to vector<8x8x8xf32>
    %41 = vector.broadcast %39 : vector<1x8x8xf32> to vector<8x8x8xf32>
    %42 = arith.mulf %40, %41 : vector<8x8x8xf32>
    %43 = arith.addf %33, %42 : vector<8x8x8xf32>
    %44 = vector.extract_strided_slice %10 {offsets = [0, 3, 0], sizes = [8, 1, 8], strides = [1, 1, 1]} : vector<8x8x8xf32> to vector<8x1x8xf32>
    %45 = vector.shape_cast %44 : vector<8x1x8xf32> to vector<8x8xf32>
    %46 = vector.shape_cast %45 : vector<8x8xf32> to vector<8x1x8xf32>
    %47 = vector.extract_strided_slice %12 {offsets = [0, 3, 0], sizes = [8, 1, 8], strides = [1, 1, 1]} : vector<8x8x8xf32> to vector<8x1x8xf32>
    %48 = vector.shape_cast %47 : vector<8x1x8xf32> to vector<8x8xf32>
    %49 = vector.shape_cast %48 : vector<8x8xf32> to vector<1x8x8xf32>
    %50 = vector.broadcast %46 : vector<8x1x8xf32> to vector<8x8x8xf32>
    %51 = vector.broadcast %49 : vector<1x8x8xf32> to vector<8x8x8xf32>
    %52 = arith.mulf %50, %51 : vector<8x8x8xf32>
    %53 = arith.addf %43, %52 : vector<8x8x8xf32>
    %54 = vector.extract_strided_slice %10 {offsets = [0, 4, 0], sizes = [8, 1, 8], strides = [1, 1, 1]} : vector<8x8x8xf32> to vector<8x1x8xf32>
    %55 = vector.shape_cast %54 : vector<8x1x8xf32> to vector<8x8xf32>
    %56 = vector.shape_cast %55 : vector<8x8xf32> to vector<8x1x8xf32>
    %57 = vector.extract_strided_slice %12 {offsets = [0, 4, 0], sizes = [8, 1, 8], strides = [1, 1, 1]} : vector<8x8x8xf32> to vector<8x1x8xf32>
    %58 = vector.shape_cast %57 : vector<8x1x8xf32> to vector<8x8xf32>
    %59 = vector.shape_cast %58 : vector<8x8xf32> to vector<1x8x8xf32>
    %60 = vector.broadcast %56 : vector<8x1x8xf32> to vector<8x8x8xf32>
    %61 = vector.broadcast %59 : vector<1x8x8xf32> to vector<8x8x8xf32>
    %62 = arith.mulf %60, %61 : vector<8x8x8xf32>
    %63 = arith.addf %53, %62 : vector<8x8x8xf32>
    %64 = vector.extract_strided_slice %10 {offsets = [0, 5, 0], sizes = [8, 1, 8], strides = [1, 1, 1]} : vector<8x8x8xf32> to vector<8x1x8xf32>
    %65 = vector.shape_cast %64 : vector<8x1x8xf32> to vector<8x8xf32>
    %66 = vector.shape_cast %65 : vector<8x8xf32> to vector<8x1x8xf32>
    %67 = vector.extract_strided_slice %12 {offsets = [0, 5, 0], sizes = [8, 1, 8], strides = [1, 1, 1]} : vector<8x8x8xf32> to vector<8x1x8xf32>
    %68 = vector.shape_cast %67 : vector<8x1x8xf32> to vector<8x8xf32>
    %69 = vector.shape_cast %68 : vector<8x8xf32> to vector<1x8x8xf32>
    %70 = vector.broadcast %66 : vector<8x1x8xf32> to vector<8x8x8xf32>
    %71 = vector.broadcast %69 : vector<1x8x8xf32> to vector<8x8x8xf32>
    %72 = arith.mulf %70, %71 : vector<8x8x8xf32>
    %73 = arith.addf %63, %72 : vector<8x8x8xf32>
    %74 = vector.extract_strided_slice %10 {offsets = [0, 6, 0], sizes = [8, 1, 8], strides = [1, 1, 1]} : vector<8x8x8xf32> to vector<8x1x8xf32>
    %75 = vector.shape_cast %74 : vector<8x1x8xf32> to vector<8x8xf32>
    %76 = vector.shape_cast %75 : vector<8x8xf32> to vector<8x1x8xf32>
    %77 = vector.extract_strided_slice %12 {offsets = [0, 6, 0], sizes = [8, 1, 8], strides = [1, 1, 1]} : vector<8x8x8xf32> to vector<8x1x8xf32>
    %78 = vector.shape_cast %77 : vector<8x1x8xf32> to vector<8x8xf32>
    %79 = vector.shape_cast %78 : vector<8x8xf32> to vector<1x8x8xf32>
    %80 = vector.broadcast %76 : vector<8x1x8xf32> to vector<8x8x8xf32>
    %81 = vector.broadcast %79 : vector<1x8x8xf32> to vector<8x8x8xf32>
    %82 = arith.mulf %80, %81 : vector<8x8x8xf32>
    %83 = arith.addf %73, %82 : vector<8x8x8xf32>
    %84 = vector.extract_strided_slice %10 {offsets = [0, 7, 0], sizes = [8, 1, 8], strides = [1, 1, 1]} : vector<8x8x8xf32> to vector<8x1x8xf32>
    %85 = vector.shape_cast %84 : vector<8x1x8xf32> to vector<8x8xf32>
    %86 = vector.shape_cast %85 : vector<8x8xf32> to vector<8x1x8xf32>
    %87 = vector.extract_strided_slice %12 {offsets = [0, 7, 0], sizes = [8, 1, 8], strides = [1, 1, 1]} : vector<8x8x8xf32> to vector<8x1x8xf32>
    %88 = vector.shape_cast %87 : vector<8x1x8xf32> to vector<8x8xf32>
    %89 = vector.shape_cast %88 : vector<8x8xf32> to vector<1x8x8xf32>
    %90 = vector.broadcast %86 : vector<8x1x8xf32> to vector<8x8x8xf32>
    %91 = vector.broadcast %89 : vector<1x8x8xf32> to vector<8x8x8xf32>
    %92 = arith.mulf %90, %91 : vector<8x8x8xf32>
    %93 = arith.addf %83, %92 : vector<8x8x8xf32>
    %cst_7 = arith.constant dense<0xFF800000> : vector<8x8xf32>
    %94 = vector.multi_reduction <maximumf>, %93, %cst_7 [1] : vector<8x8x8xf32> to vector<8x8xf32>
    %95 = vector.shape_cast %94 : vector<8x8xf32> to vector<8x1x8xf32>
    %96 = vector.broadcast %95 : vector<8x1x8xf32> to vector<8x8x8xf32>
    %97 = arith.subf %93, %96 : vector<8x8x8xf32>
    %98 = math.exp %97 : vector<8x8x8xf32>
    %cst_8 = arith.constant dense<0.000000e+00> : vector<8x8xf32>
    %99 = vector.multi_reduction <add>, %98, %cst_8 [1] : vector<8x8x8xf32> to vector<8x8xf32>
    %100 = vector.shape_cast %99 : vector<8x8xf32> to vector<8x1x8xf32>
    %101 = vector.broadcast %100 : vector<8x1x8xf32> to vector<8x8x8xf32>
    %102 = arith.divf %98, %101 : vector<8x8x8xf32>
    %103 = vector.extract_strided_slice %102 {offsets = [0, 0, 0], sizes = [8, 1, 8], strides = [1, 1, 1]} : vector<8x8x8xf32> to vector<8x1x8xf32>
    %104 = vector.shape_cast %103 : vector<8x1x8xf32> to vector<8x8xf32>
    %105 = vector.shape_cast %104 : vector<8x8xf32> to vector<8x1x8xf32>
    %106 = vector.extract_strided_slice %14 {offsets = [0, 0, 0], sizes = [1, 8, 8], strides = [1, 1, 1]} : vector<8x8x8xf32> to vector<1x8x8xf32>
    %107 = vector.shape_cast %106 : vector<1x8x8xf32> to vector<8x8xf32>
    %108 = vector.shape_cast %107 : vector<8x8xf32> to vector<1x8x8xf32>
    %109 = vector.broadcast %105 : vector<8x1x8xf32> to vector<8x8x8xf32>
    %110 = vector.broadcast %108 : vector<1x8x8xf32> to vector<8x8x8xf32>
    %111 = arith.mulf %109, %110 : vector<8x8x8xf32>
    %112 = vector.extract_strided_slice %102 {offsets = [0, 1, 0], sizes = [8, 1, 8], strides = [1, 1, 1]} : vector<8x8x8xf32> to vector<8x1x8xf32>
    %113 = vector.shape_cast %112 : vector<8x1x8xf32> to vector<8x8xf32>
    %114 = vector.shape_cast %113 : vector<8x8xf32> to vector<8x1x8xf32>
    %115 = vector.extract_strided_slice %14 {offsets = [1, 0, 0], sizes = [1, 8, 8], strides = [1, 1, 1]} : vector<8x8x8xf32> to vector<1x8x8xf32>
    %116 = vector.shape_cast %115 : vector<1x8x8xf32> to vector<8x8xf32>
    %117 = vector.shape_cast %116 : vector<8x8xf32> to vector<1x8x8xf32>
    %118 = vector.broadcast %114 : vector<8x1x8xf32> to vector<8x8x8xf32>
    %119 = vector.broadcast %117 : vector<1x8x8xf32> to vector<8x8x8xf32>
    %120 = arith.mulf %118, %119 : vector<8x8x8xf32>
    %121 = arith.addf %111, %120 : vector<8x8x8xf32>
    %122 = vector.extract_strided_slice %102 {offsets = [0, 2, 0], sizes = [8, 1, 8], strides = [1, 1, 1]} : vector<8x8x8xf32> to vector<8x1x8xf32>
    %123 = vector.shape_cast %122 : vector<8x1x8xf32> to vector<8x8xf32>
    %124 = vector.shape_cast %123 : vector<8x8xf32> to vector<8x1x8xf32>
    %125 = vector.extract_strided_slice %14 {offsets = [2, 0, 0], sizes = [1, 8, 8], strides = [1, 1, 1]} : vector<8x8x8xf32> to vector<1x8x8xf32>
    %126 = vector.shape_cast %125 : vector<1x8x8xf32> to vector<8x8xf32>
    %127 = vector.shape_cast %126 : vector<8x8xf32> to vector<1x8x8xf32>
    %128 = vector.broadcast %124 : vector<8x1x8xf32> to vector<8x8x8xf32>
    %129 = vector.broadcast %127 : vector<1x8x8xf32> to vector<8x8x8xf32>
    %130 = arith.mulf %128, %129 : vector<8x8x8xf32>
    %131 = arith.addf %121, %130 : vector<8x8x8xf32>
    %132 = vector.extract_strided_slice %102 {offsets = [0, 3, 0], sizes = [8, 1, 8], strides = [1, 1, 1]} : vector<8x8x8xf32> to vector<8x1x8xf32>
    %133 = vector.shape_cast %132 : vector<8x1x8xf32> to vector<8x8xf32>
    %134 = vector.shape_cast %133 : vector<8x8xf32> to vector<8x1x8xf32>
    %135 = vector.extract_strided_slice %14 {offsets = [3, 0, 0], sizes = [1, 8, 8], strides = [1, 1, 1]} : vector<8x8x8xf32> to vector<1x8x8xf32>
    %136 = vector.shape_cast %135 : vector<1x8x8xf32> to vector<8x8xf32>
    %137 = vector.shape_cast %136 : vector<8x8xf32> to vector<1x8x8xf32>
    %138 = vector.broadcast %134 : vector<8x1x8xf32> to vector<8x8x8xf32>
    %139 = vector.broadcast %137 : vector<1x8x8xf32> to vector<8x8x8xf32>
    %140 = arith.mulf %138, %139 : vector<8x8x8xf32>
    %141 = arith.addf %131, %140 : vector<8x8x8xf32>
    %142 = vector.extract_strided_slice %102 {offsets = [0, 4, 0], sizes = [8, 1, 8], strides = [1, 1, 1]} : vector<8x8x8xf32> to vector<8x1x8xf32>
    %143 = vector.shape_cast %142 : vector<8x1x8xf32> to vector<8x8xf32>
    %144 = vector.shape_cast %143 : vector<8x8xf32> to vector<8x1x8xf32>
    %145 = vector.extract_strided_slice %14 {offsets = [4, 0, 0], sizes = [1, 8, 8], strides = [1, 1, 1]} : vector<8x8x8xf32> to vector<1x8x8xf32>
    %146 = vector.shape_cast %145 : vector<1x8x8xf32> to vector<8x8xf32>
    %147 = vector.shape_cast %146 : vector<8x8xf32> to vector<1x8x8xf32>
    %148 = vector.broadcast %144 : vector<8x1x8xf32> to vector<8x8x8xf32>
    %149 = vector.broadcast %147 : vector<1x8x8xf32> to vector<8x8x8xf32>
    %150 = arith.mulf %148, %149 : vector<8x8x8xf32>
    %151 = arith.addf %141, %150 : vector<8x8x8xf32>
    %152 = vector.extract_strided_slice %102 {offsets = [0, 5, 0], sizes = [8, 1, 8], strides = [1, 1, 1]} : vector<8x8x8xf32> to vector<8x1x8xf32>
    %153 = vector.shape_cast %152 : vector<8x1x8xf32> to vector<8x8xf32>
    %154 = vector.shape_cast %153 : vector<8x8xf32> to vector<8x1x8xf32>
    %155 = vector.extract_strided_slice %14 {offsets = [5, 0, 0], sizes = [1, 8, 8], strides = [1, 1, 1]} : vector<8x8x8xf32> to vector<1x8x8xf32>
    %156 = vector.shape_cast %155 : vector<1x8x8xf32> to vector<8x8xf32>
    %157 = vector.shape_cast %156 : vector<8x8xf32> to vector<1x8x8xf32>
    %158 = vector.broadcast %154 : vector<8x1x8xf32> to vector<8x8x8xf32>
    %159 = vector.broadcast %157 : vector<1x8x8xf32> to vector<8x8x8xf32>
    %160 = arith.mulf %158, %159 : vector<8x8x8xf32>
    %161 = arith.addf %151, %160 : vector<8x8x8xf32>
    %162 = vector.extract_strided_slice %102 {offsets = [0, 6, 0], sizes = [8, 1, 8], strides = [1, 1, 1]} : vector<8x8x8xf32> to vector<8x1x8xf32>
    %163 = vector.shape_cast %162 : vector<8x1x8xf32> to vector<8x8xf32>
    %164 = vector.shape_cast %163 : vector<8x8xf32> to vector<8x1x8xf32>
    %165 = vector.extract_strided_slice %14 {offsets = [6, 0, 0], sizes = [1, 8, 8], strides = [1, 1, 1]} : vector<8x8x8xf32> to vector<1x8x8xf32>
    %166 = vector.shape_cast %165 : vector<1x8x8xf32> to vector<8x8xf32>
    %167 = vector.shape_cast %166 : vector<8x8xf32> to vector<1x8x8xf32>
    %168 = vector.broadcast %164 : vector<8x1x8xf32> to vector<8x8x8xf32>
    %169 = vector.broadcast %167 : vector<1x8x8xf32> to vector<8x8x8xf32>
    %170 = arith.mulf %168, %169 : vector<8x8x8xf32>
    %171 = arith.addf %161, %170 : vector<8x8x8xf32>
    %172 = vector.extract_strided_slice %102 {offsets = [0, 7, 0], sizes = [8, 1, 8], strides = [1, 1, 1]} : vector<8x8x8xf32> to vector<8x1x8xf32>
    %173 = vector.shape_cast %172 : vector<8x1x8xf32> to vector<8x8xf32>
    %174 = vector.shape_cast %173 : vector<8x8xf32> to vector<8x1x8xf32>
    %175 = vector.extract_strided_slice %14 {offsets = [7, 0, 0], sizes = [1, 8, 8], strides = [1, 1, 1]} : vector<8x8x8xf32> to vector<1x8x8xf32>
    %176 = vector.shape_cast %175 : vector<1x8x8xf32> to vector<8x8xf32>
    %177 = vector.shape_cast %176 : vector<8x8xf32> to vector<1x8x8xf32>
    %178 = vector.broadcast %174 : vector<8x1x8xf32> to vector<8x8x8xf32>
    %179 = vector.broadcast %177 : vector<1x8x8xf32> to vector<8x8x8xf32>
    %180 = arith.mulf %178, %179 : vector<8x8x8xf32>
    %181 = arith.addf %171, %180 : vector<8x8x8xf32>
    %182 = vector.shape_cast %181 : vector<8x8x8xf32> to vector<64x8xf32>
    %183 = tpu.transpose %182, [1, 0] : vector<64x8xf32> -> vector<8x64xf32>
    %c0_9 = arith.constant 0 : index
    %c0_10 = arith.constant 0 : index
    %184 = vector.load %arg4[%c0_9, %c0_10] : memref<64x64xf32, #tpu.memory_space<vmem>>, vector<64x64xf32>
    %cst_11 = arith.constant dense<0.000000e+00> : vector<8x64xf32>
    %185 = tpu.matmul %183, %184, %cst_11 {dimension_numbers = #tpu.dot_dimension_numbers<[1], [1], [0], [0], [0, 0, 1, 0], [], []>} : vector<8x64xf32>, vector<64x64xf32>, vector<8x64xf32> -> vector<8x64xf32>
    %c0_12 = arith.constant 0 : index
    %c0_13 = arith.constant 0 : index
    %186 = vector.load %arg5[%c0_12, %c0_13] : memref<1x64xf32, #tpu.memory_space<vmem>>, vector<1x64xf32>
    %187 = vector.broadcast %186 : vector<1x64xf32> to vector<8x64xf32>
    %188 = arith.addf %185, %187 : vector<8x64xf32>
    %189 = arith.addf %188, %1 : vector<8x64xf32>
    %cst_14 = arith.constant dense<0.000000e+00> : vector<8xf32>
    %190 = vector.multi_reduction <add>, %189, %cst_14 [1] : vector<8x64xf32> to vector<8xf32>
    %191 = vector.shape_cast %190 : vector<8xf32> to vector<8x1xf32>
    %cst_15 = arith.constant 6.400000e+01 : f32
    %192 = vector.broadcast %cst_15 : f32 to vector<8x1xf32>
    %193 = arith.divf %191, %192 : vector<8x1xf32>
    %194 = vector.broadcast %193 : vector<8x1xf32> to vector<8x64xf32>
    %195 = arith.subf %189, %194 : vector<8x64xf32>
    %196 = arith.mulf %195, %195 : vector<8x64xf32>
    %cst_16 = arith.constant dense<0.000000e+00> : vector<8xf32>
    %197 = vector.multi_reduction <add>, %196, %cst_16 [1] : vector<8x64xf32> to vector<8xf32>
    %198 = vector.shape_cast %197 : vector<8xf32> to vector<8x1xf32>
    %cst_17 = arith.constant 6.400000e+01 : f32
    %199 = vector.broadcast %cst_17 : f32 to vector<8x1xf32>
    %200 = arith.divf %198, %199 : vector<8x1xf32>
    %201 = vector.broadcast %193 : vector<8x1xf32> to vector<8x64xf32>
    %202 = arith.subf %189, %201 : vector<8x64xf32>
    %cst_18 = arith.constant 9.99999974E-6 : f32
    %203 = vector.broadcast %cst_18 : f32 to vector<8x1xf32>
    %204 = arith.addf %200, %203 : vector<8x1xf32>
    %205 = math.rsqrt %204 : vector<8x1xf32>
    %206 = vector.broadcast %205 : vector<8x1xf32> to vector<8x64xf32>
    %207 = arith.mulf %202, %206 : vector<8x64xf32>
    %c0_19 = arith.constant 0 : index
    %c0_20 = arith.constant 0 : index
    %208 = vector.load %arg6[%c0_19, %c0_20] : memref<1x64xf32, #tpu.memory_space<vmem>>, vector<1x64xf32>
    %209 = vector.broadcast %208 : vector<1x64xf32> to vector<8x64xf32>
    %210 = arith.mulf %207, %209 : vector<8x64xf32>
    %c0_21 = arith.constant 0 : index
    %c0_22 = arith.constant 0 : index
    %211 = vector.load %arg7[%c0_21, %c0_22] : memref<1x64xf32, #tpu.memory_space<vmem>>, vector<1x64xf32>
    %212 = vector.broadcast %211 : vector<1x64xf32> to vector<8x64xf32>
    %213 = arith.addf %210, %212 : vector<8x64xf32>
    %c0_23 = arith.constant 0 : index
    %c0_24 = arith.constant 0 : index
    %214 = vector.load %arg8[%c0_23, %c0_24] : memref<32x64xf32, #tpu.memory_space<vmem>>, vector<32x64xf32>
    %cst_25 = arith.constant dense<0.000000e+00> : vector<8x32xf32>
    %215 = tpu.matmul %213, %214, %cst_25 {dimension_numbers = #tpu.dot_dimension_numbers<[1], [1], [0], [0], [0, 0, 1, 0], [], []>} : vector<8x64xf32>, vector<32x64xf32>, vector<8x32xf32> -> vector<8x32xf32>
    %c0_26 = arith.constant 0 : index
    %c0_27 = arith.constant 0 : index
    %216 = vector.load %arg9[%c0_26, %c0_27] : memref<1x32xf32, #tpu.memory_space<vmem>>, vector<1x32xf32>
    %217 = vector.broadcast %216 : vector<1x32xf32> to vector<8x32xf32>
    %218 = arith.addf %215, %217 : vector<8x32xf32>
    %cst_28 = arith.constant 0.000000e+00 : f32
    %219 = vector.broadcast %cst_28 : f32 to vector<8x32xf32>
    %220 = arith.maximumf %218, %219 : vector<8x32xf32>
    %c0_29 = arith.constant 0 : index
    %c0_30 = arith.constant 0 : index
    %221 = vector.load %arg10[%c0_29, %c0_30] : memref<64x32xf32, #tpu.memory_space<vmem>>, vector<64x32xf32>
    %cst_31 = arith.constant dense<0.000000e+00> : vector<8x64xf32>
    %222 = tpu.matmul %220, %221, %cst_31 {dimension_numbers = #tpu.dot_dimension_numbers<[1], [1], [0], [0], [0, 0, 1, 0], [], []>} : vector<8x32xf32>, vector<64x32xf32>, vector<8x64xf32> -> vector<8x64xf32>
    %c0_32 = arith.constant 0 : index
    %c0_33 = arith.constant 0 : index
    %223 = vector.load %arg11[%c0_32, %c0_33] : memref<1x64xf32, #tpu.memory_space<vmem>>, vector<1x64xf32>
    %224 = vector.broadcast %223 : vector<1x64xf32> to vector<8x64xf32>
    %225 = arith.addf %222, %224 : vector<8x64xf32>
    %226 = arith.addf %225, %213 : vector<8x64xf32>
    %cst_34 = arith.constant dense<0.000000e+00> : vector<8xf32>
    %227 = vector.multi_reduction <add>, %226, %cst_34 [1] : vector<8x64xf32> to vector<8xf32>
    %228 = vector.shape_cast %227 : vector<8xf32> to vector<8x1xf32>
    %cst_35 = arith.constant 6.400000e+01 : f32
    %229 = vector.broadcast %cst_35 : f32 to vector<8x1xf32>
    %230 = arith.divf %228, %229 : vector<8x1xf32>
    %231 = vector.broadcast %230 : vector<8x1xf32> to vector<8x64xf32>
    %232 = arith.subf %226, %231 : vector<8x64xf32>
    %233 = arith.mulf %232, %232 : vector<8x64xf32>
    %cst_36 = arith.constant dense<0.000000e+00> : vector<8xf32>
    %234 = vector.multi_reduction <add>, %233, %cst_36 [1] : vector<8x64xf32> to vector<8xf32>
    %235 = vector.shape_cast %234 : vector<8xf32> to vector<8x1xf32>
    %cst_37 = arith.constant 6.400000e+01 : f32
    %236 = vector.broadcast %cst_37 : f32 to vector<8x1xf32>
    %237 = arith.divf %235, %236 : vector<8x1xf32>
    %238 = vector.broadcast %230 : vector<8x1xf32> to vector<8x64xf32>
    %239 = arith.subf %226, %238 : vector<8x64xf32>
    %cst_38 = arith.constant 9.99999974E-6 : f32
    %240 = vector.broadcast %cst_38 : f32 to vector<8x1xf32>
    %241 = arith.addf %237, %240 : vector<8x1xf32>
    %242 = math.rsqrt %241 : vector<8x1xf32>
    %243 = vector.broadcast %242 : vector<8x1xf32> to vector<8x64xf32>
    %244 = arith.mulf %239, %243 : vector<8x64xf32>
    %c0_39 = arith.constant 0 : index
    %c0_40 = arith.constant 0 : index
    %245 = vector.load %arg12[%c0_39, %c0_40] : memref<1x64xf32, #tpu.memory_space<vmem>>, vector<1x64xf32>
    %246 = vector.broadcast %245 : vector<1x64xf32> to vector<8x64xf32>
    %247 = arith.mulf %244, %246 : vector<8x64xf32>
    %c0_41 = arith.constant 0 : index
    %c0_42 = arith.constant 0 : index
    %248 = vector.load %arg13[%c0_41, %c0_42] : memref<1x64xf32, #tpu.memory_space<vmem>>, vector<1x64xf32>
    %249 = vector.broadcast %248 : vector<1x64xf32> to vector<8x64xf32>
    %250 = arith.addf %247, %249 : vector<8x64xf32>
    %c0_43 = arith.constant 0 : index
    %c0_44 = arith.constant 0 : index
    %c0_45 = arith.constant 0 : index
    %251 = vector.load %arg14[%c0_43, %c0_44, %c0_45] : memref<1x8x64xf32, #tpu.memory_space<vmem>>, vector<1x8x64xf32>
    %252 = vector.shape_cast %251 : vector<1x8x64xf32> to vector<8x64xf32>
    %253 = vector.shape_cast %250 : vector<8x64xf32> to vector<1x8x64xf32>
    tpu.vector_store %arg14[%c0_43, %c0_44, %c0_45], %253 {strides = array<i32>} : memref<1x8x64xf32, #tpu.memory_space<vmem>>, vector<1x8x64xf32>,
    return
  }
  func.func @transform_0(%arg0: i32) -> (i32, i32, i32) {
    %c0_i32 = arith.constant 0 : i32
    %c0_i32_0 = arith.constant 0 : i32
    %c0_i32_1 = arith.constant 0 : i32
    return %arg0, %c0_i32, %c0_i32_0 : i32, i32, i32
  }
  func.func @transform_1(%arg0: i32) -> (i32, i32) {
    %c0_i32 = arith.constant 0 : i32
    %c0_i32_0 = arith.constant 0 : i32
    %c0_i32_1 = arith.constant 0 : i32
    return %c0_i32, %c0_i32_0 : i32, i32
  }
  func.func @transform_2(%arg0: i32) -> (i32, i32) {
    %c0_i32 = arith.constant 0 : i32
    %c0_i32_0 = arith.constant 0 : i32
    %c0_i32_1 = arith.constant 0 : i32
    return %c0_i32, %c0_i32_0 : i32, i32
  }
  func.func @transform_3(%arg0: i32) -> (i32, i32) {
    %c0_i32 = arith.constant 0 : i32
    %c0_i32_0 = arith.constant 0 : i32
    %c0_i32_1 = arith.constant 0 : i32
    return %c0_i32, %c0_i32_0 : i32, i32
  }
  func.func @transform_4(%arg0: i32) -> (i32, i32) {
    %c0_i32 = arith.constant 0 : i32
    %c0_i32_0 = arith.constant 0 : i32
    %c0_i32_1 = arith.constant 0 : i32
    return %c0_i32, %c0_i32_0 : i32, i32
  }
  func.func @transform_5(%arg0: i32) -> (i32, i32) {
    %c0_i32 = arith.constant 0 : i32
    %c0_i32_0 = arith.constant 0 : i32
    %c0_i32_1 = arith.constant 0 : i32
    return %c0_i32, %c0_i32_0 : i32, i32
  }
  func.func @transform_6(%arg0: i32) -> (i32, i32) {
    %c0_i32 = arith.constant 0 : i32
    %c0_i32_0 = arith.constant 0 : i32
    %c0_i32_1 = arith.constant 0 : i32
    return %c0_i32, %c0_i32_0 : i32, i32
  }
  func.func @transform_7(%arg0: i32) -> (i32, i32) {
    %c0_i32 = arith.constant 0 : i32
    %c0_i32_0 = arith.constant 0 : i32
    %c0_i32_1 = arith.constant 0 : i32
    return %c0_i32, %c0_i32_0 : i32, i32
  }
  func.func @transform_8(%arg0: i32) -> (i32, i32) {
    %c0_i32 = arith.constant 0 : i32
    %c0_i32_0 = arith.constant 0 : i32
    %c0_i32_1 = arith.constant 0 : i32
    return %c0_i32, %c0_i32_0 : i32, i32
  }
  func.func @transform_9(%arg0: i32) -> (i32, i32) {
    %c0_i32 = arith.constant 0 : i32
    %c0_i32_0 = arith.constant 0 : i32
    %c0_i32_1 = arith.constant 0 : i32
    return %c0_i32, %c0_i32_0 : i32, i32
  }
  func.func @transform_10(%arg0: i32) -> (i32, i32) {
    %c0_i32 = arith.constant 0 : i32
    %c0_i32_0 = arith.constant 0 : i32
    %c0_i32_1 = arith.constant 0 : i32
    return %c0_i32, %c0_i32_0 : i32, i32
  }
  func.func @transform_11(%arg0: i32) -> (i32, i32) {
    %c0_i32 = arith.constant 0 : i32
    %c0_i32_0 = arith.constant 0 : i32
    %c0_i32_1 = arith.constant 0 : i32
    return %c0_i32, %c0_i32_0 : i32, i32
  }
  func.func @transform_12(%arg0: i32) -> (i32, i32) {
    %c0_i32 = arith.constant 0 : i32
    %c0_i32_0 = arith.constant 0 : i32
    %c0_i32_1 = arith.constant 0 : i32
    return %c0_i32, %c0_i32_0 : i32, i32
  }
  func.func @transform_13(%arg0: i32) -> (i32, i32, i32) {
    %c0_i32 = arith.constant 0 : i32
    %c0_i32_0 = arith.constant 0 : i32
    %c0_i32_1 = arith.constant 0 : i32
    return %arg0, %c0_i32, %c0_i32_0 : i32, i32, i32
  }
}

</mosaic_0001>

<bundles_post_ra>
// kernel: encoder_forward.1
= control target key start
LH: loop header
LB: loop body
LE: loop exit
PB: predicated region body
PF: predicated region fallthrough
CT: control target
= control target key end

     0   :  { %s3425_s0 = inlined_call_operand.vmem [shape: f32[2,8,64], index: 0, kind: input, shape index: {}]   ;;  %s3426_s1 = inlined_call_operand.vmem [shape: f32[192,64], index: 1, kind: input, shape index: {}]   ;;  %s3427_s2 = inlined_call_operand.vmem [shape: f32[192,1], index: 2, kind: input, shape index: {}]   ;;  %s3428_s3 = inlined_call_operand.vmem [shape: f32[64,64], index: 3, kind: input, shape index: {}]   ;;  %s3429_s4 = inlined_call_operand.vmem [shape: f32[1,64], index: 4, kind: input, shape index: {}]   ;;  %s3430_s5 = inlined_call_operand.vmem [shape: f32[1,64], index: 5, kind: input, shape index: {}]   ;;  %s3431_s6 = inlined_call_operand.vmem [shape: f32[1,64], index: 6, kind: input, shape index: {}]   ;;  %s3432_s7 = inlined_call_operand.vmem [shape: f32[32,64], index: 7, kind: input, shape index: {}]   ;;  %s3433_s8 = inlined_call_operand.vmem [shape: f32[1,32], index: 8, kind: input, shape index: {}]   ;;  %s3434_s9 = inlined_call_operand.vmem [shape: f32[64,32], index: 9, kind: input, shape index: {}]   ;;  %s3435_s10 = inlined_call_operand.vmem [shape: f32[1,64], index: 10, kind: input, shape index: {}]   ;;  %s3436_s11 = inlined_call_operand.vmem [shape: f32[1,64], index: 11, kind: input, shape index: {}]   ;;  %s3437_s12 = inlined_call_operand.vmem [shape: f32[1,64], index: 12, kind: input, shape index: {}]   ;;  %s3438_s13 = inlined_call_operand.hbm [shape: f32[2,8,64], index: 13, kind: output, shape index: {}]  }
   0x1   :  { %3443 = sst [smem:[#allocation9_spill]] %s3425_s0 }
   0x2   :  { %18 = vsyncpa [#allocation3], 0 }
   0x3   :  { %20 = vsyncpa [#allocation3 + $0x1], 0  ;;  %s2169_s25 = smov 0   ;;  %s2171_s26 = smov 0  }
   0x4   :  { %s2173_s27 = smov 0   ;;  %s2175_s28 = smov 0  }
   0x5 LB: > { %3444 = sst [smem:[#allocation5_spill]] %s2091_s27  ;;  %s2190_s29 = sadd.s32 4294967295, %s2095_s28   ;;  %s2095_s28 = sphi %s2175_s28, %s3542_s28   ;;  %s2091_s27 = sphi %s2173_s27, %s3544_s27   ;;  %s2087_s26 = sphi %s2171_s26, %s3546_s26   ;;  %s2083_s25 = sphi %s2169_s25, %s3545_s25  }
   0x6   : > { %s1882_s30 = sadd.s32 4294967294, %s2095_s28   ;;  %s2194_s14 = sadd.s32 1, %s2095_s28  }
   0x7   : > { %3445 = sst [smem:[#allocation6_spill]] %s2194_s14  ;;  %s311_s15 = sadd.s32 1, %s2091_s27 }
   0x8   : > { %s308_s16 = ssub.s32 %s2095_s28, %s2194_s14  ;;  %p321_p0 = scmp.ne.s32.totalorder %s2091_s27, %s2087_s26 }
   0x9   : > { %p309_p1 = scmp.eq.s32.totalorder %s308_s16, 0  ;;  %p322_p2 = scmp.eq.s32.totalorder %s2190_s29, 1 }
   0xa   : > { %p327_p3 = scmp.ne.s32.totalorder %s2087_s26, %s2083_s25  ;;  %p328_p4 = scmp.eq.s32.totalorder %s1882_s30, 1 }
   0xb   : > { %s2205_s17 = scalar_select %p309_p1, %s2091_s27, %s311_s15  }
   0xc   : > { %p2207_p5 = por %p322_p2, %p321_p0  ;;  %p2211_p6 = por %p328_p4, %p327_p3 }
   0xd   : > { %3446 = sst [smem:[#allocation7_spill]] %s2205_s17  ;;  %p1885_p7 = scmp.ge.s32.totalorder %s2095_s28, 1 }
   0xe   : > { %s3448_s19 = scalar_select %p2211_p6, 1, 0 }
   0xf   : > { %p389_p8 = scmp.lt.s32.totalorder %s2095_s28, 3 }
  0x10   : > { %3449 = sst [smem:[#allocation8_spill]] %s3448_s19 }
  0x11   : > { %p390_p9 = pnand %p1885_p7, %p389_p8 }
  0x12   : > { %p432_p10 = scmp.lt.s32.totalorder (!%p390_p9), %s2190_s29, 1  ;;  %s3450_s0 = sld [smem:[#allocation9_spill]] (!%p390_p9) }
  0x13   : > { %393 = sbr.rel (%p390_p9) target bundleno = 1481 (0x5c9), region = 72  ;;  %s429_s23 = sand.u32 (!%p390_p9), 1, %s2087_s26  }
  0x14   : > { %s1808_s19 = scalar_lea.sflag (!%p390_p9), [#allocation3], %s429_s23 }
  0x18   : > { %v469_v0 = vld [vmem:[%s3427_s2 + $0x40] sm:$0xff]  ;;  %v2097_v1 = vmov 0   ;;  %v471_v2 = vld [vmem:[%s3427_s2 + $0x50] sm:$0xff]  ;;  %s433_s24 = scalar_select %p432_p10, %s2190_s29, 1  ;;  %vm605_vm0 = vcmask 523264   ;;  %v446_v5 = vld [vmem:[%s3426_s1 + $0x48] sm:$0xff] }
  0x19   : > { %1984 = vset.pattern.permute.xlu0 %v2097_v1  ;;  %1985 = vset.pattern.permute.xlu1 %v2097_v1  ;;  %v437_v3 = vld [vmem:[%s3426_s1] sm:$0xff]  ;;  %v454_v6 = vld [vmem:[%s3426_s1 + $0x88] sm:$0xff]  ;;  %v472_v8 = vld [vmem:[%s3427_s2 + $0x58] sm:$0xff]  ;;  %vm795_vm1 = vcmask 1041409   ;;  %vm798_vm2 = vcmask 1042434   ;;  %vm801_vm3 = vcmask 1043459  }
  0x1a   : > { %527 = vperm.xlu0 %1984, %v469_v0   ;;  %537 = vperm.xlu1 %1985, %v471_v2   ;;  %s1887_s30 = sshll.u32 %s433_s24, 3  ;;  %v470_v7 = vld [vmem:[%s3427_s2 + $0x48] sm:$0xff]  ;;  %v473_v9 = vld [vmem:[%s3427_s2 + $0x60] sm:$0xff]  ;;  %v447_v11 = vld [vmem:[%s3426_s1 + $0x50] sm:$0xff]  ;;  %vm804_vm4 = vcmask 1044484   ;;  %vm807_vm5 = vcmask 1045509  }
  0x1b   : > { %1986 = vset.pattern.permute.xlu2 %v2097_v1  ;;  %s2228_s20 = scalar_lea.vmem %s3450_s0, %s1887_s30  ;;  %v438_v10 = vld [vmem:[%s3426_s1 + $0x8] sm:$0xff]  ;;  %v455_v12 = vld [vmem:[%s3426_s1 + $0x90] sm:$0xff]  ;;  %v461_v13 = vld [vmem:[%s3427_s2] sm:$0xff]  ;;  %vm810_vm6 = vcmask 1046534   ;;  %vm813_vm7 = vcmask 1047559   ;;  %vm1097_vm8 = vcmask 64512  }
  0x1c   : > { %v436_v4 = vld [vmem:[%s2228_s20] sm:$0xff]  ;;  %547 = vperm.xlu2 %1986, %v473_v9   ;;  %v475_v14 = vld [vmem:[%s3427_s2 + $0x70] sm:$0xff]  ;;  %v474_v15 = vld [vmem:[%s3427_s2 + $0x68] sm:$0xff]  ;;  %s1886_s24 = sshll.u32 %s429_s23, 3  ;;  %s1937_s30 = sshll.u32 %s2190_s29, 3 }
  0x1d   : > { %1888 = vmatpush.xpose.msk.msra.mxu0 %vm605_vm0, %v436_v4  ;;  %1940 = vmatpush.xpose.msk.msra.mxu1 %vm605_vm0, %v436_v4  ;;  %v439_v16 = vld [vmem:[%s3426_s1 + $0x10] sm:$0xff]  ;;  %v448_v17 = vld [vmem:[%s3426_s1 + $0x58] sm:$0xff]  ;;  %v462_v19 = vld [vmem:[%s3427_s2 + $0x8] sm:$0xff]  ;;  %s1818_s16 = scalar_lea.hbm %s3438_s13, %s1937_s30  ;;  %s431_s0 = scalar_lea.vmem [#allocation2], %s1886_s24 }
  0x1e   : > { %1941 = vmatpush.xpose.msk.msra.mxu2 %vm605_vm0, %v436_v4  ;;  %v456_v18 = vld [vmem:[%s3426_s1 + $0x98] sm:$0xff]  ;;  %v463_v20 = vld [vmem:[%s3427_s2 + $0x10] sm:$0xff]  ;;  %v449_v23 = vld [vmem:[%s3426_s1 + $0x60] sm:$0xff]  ;;  %s1820_s29 = sshll.u32 %s431_s0, 4  ;;  %s2053_s24 = scalar_lea.hbm %s3438_s13, 16  ;;  %s1821_s29 = int_to_ptr.vmem [resolvable:$true] %s1820_s29 }
  0x1f   : > { %v476_v21 = vld [vmem:[%s3427_s2 + $0x78] sm:$0xff]  ;;  %v457_v24 = vld [vmem:[%s3426_s1 + $0xa0] sm:$0xff]  ;;  %v466_v26 = vld [vmem:[%s3427_s2 + $0x28] sm:$0xff] }
  0x20   : > { %1889 = vmatmul.msk.f32.vlgmr.msra.gmra.mxu0 %vm605_vm0, %v437_v3  ;;  %1898 = vmatmul.msk.f32.vlgmr.msra.gmra.mxu1 %vm605_vm0, %v446_v5  ;;  %v440_v22 = vld [vmem:[%s3426_s1 + $0x18] sm:$0xff]  ;;  %v465_v25 = vld [vmem:[%s3427_s2 + $0x20] sm:$0xff]  ;;  %v450_v29 = vld [vmem:[%s3426_s1 + $0x68] sm:$0xff] }
  0x21   : > { %1906 = vmatmul.msk.f32.vlgmr.msra.gmra.mxu2 %vm605_vm0, %v454_v6  ;;  %v464_v27 = vld [vmem:[%s3427_s2 + $0x18] sm:$0xff]  ;;  %v441_v28 = vld [vmem:[%s3426_s1 + $0x20] sm:$0xff]  ;;  %v458_v30 = vld [vmem:[%s3426_s1 + $0xa8] sm:$0xff] }
  0x22   : > { %532 = vperm.xlu0 %1984, %v470_v7   ;;  %542 = vperm.xlu1 %1985, %v472_v8   ;;  %v468_v31 = vld [vmem:[%s3427_s2 + $0x38] sm:$0xff]  ;;  %v477_v32 = vld [vmem:[%s3427_s2 + $0x80] sm:$0xff]  ;;  %v467_v33 = vld [vmem:[%s3427_s2 + $0x30] sm:$0xff] }
  0x23   : > { %v442_v34 = vld [vmem:[%s3426_s1 + $0x28] sm:$0xff]  ;;  %v451_v35 = vld [vmem:[%s3426_s1 + $0x70] sm:$0xff]  ;;  %v480_v38 = vld [vmem:[%s3427_s2 + $0x98] sm:$0xff] }
  0x24   : > { %552 = vperm.xlu2 %1986, %v474_v15   ;;  %v459_v36 = vld [vmem:[%s3426_s1 + $0xb0] sm:$0xff]  ;;  %v478_v39 = vld [vmem:[%s3427_s2 + $0x88] sm:$0xff]  ;;  %v452_v41 = vld [vmem:[%s3426_s1 + $0x78] sm:$0xff] }
  0x25   : > { %v479_v37 = vld [vmem:[%s3427_s2 + $0x90] sm:$0xff]  ;;  %v460_v42 = vld [vmem:[%s3426_s1 + $0xb8] sm:$0xff]  ;;  %v482_v43 = vld [vmem:[%s3427_s2 + $0xa8] sm:$0xff] }
  0x26   : > { %v443_v40 = vld [vmem:[%s3426_s1 + $0x30] sm:$0xff]  ;;  %v481_v45 = vld [vmem:[%s3427_s2 + $0xa0] sm:$0xff]  ;;  %v444_v46 = vld [vmem:[%s3426_s1 + $0x38] sm:$0xff] }
  0x27   : > { %v483_v44 = vld [vmem:[%s3427_s2 + $0xb0] sm:$0xff]  ;;  %v453_v47 = vld [vmem:[%s3426_s1 + $0x80] sm:$0xff]  ;;  %v484_v48 = vld [vmem:[%s3427_s2 + $0xb8] sm:$0xff] }
  0x28   : > { %1890 = vmatmul.msk.f32.gmra.mxu0 %vm605_vm0, %v438_v10  ;;  %1899 = vmatmul.msk.f32.gmra.mxu1 %vm605_vm0, %v447_v11  ;;  %v445_v49 = vld [vmem:[%s3426_s1 + $0x40] sm:$0xff] }
  0x29   : > { %1907 = vmatmul.msk.f32.gmra.mxu2 %vm605_vm0, %v455_v12 }
  0x2a   : > { %487 = vperm.xlu0 %1984, %v461_v13   ;;  %557 = vperm.xlu1 %1985, %v475_v14  }
  0x2c   : > { %562 = vperm.xlu2 %1986, %v476_v21  }
  0x30   : > { %1891 = vmatmul.msk.f32.gmra.mxu0 %vm605_vm0, %v439_v16  ;;  %1900 = vmatmul.msk.f32.gmra.mxu1 %vm605_vm0, %v448_v17 }
  0x31   : > { %1908 = vmatmul.msk.f32.gmra.mxu2 %vm605_vm0, %v456_v18 }
  0x32   : > { %492 = vperm.xlu0 %1984, %v462_v19   ;;  %497 = vperm.xlu1 %1985, %v463_v20  }
  0x34   : > { %502 = vperm.xlu2 %1986, %v464_v27  }
  0x38   : > { %1892 = vmatmul.msk.f32.gmra.mxu0 %vm605_vm0, %v440_v22  ;;  %1901 = vmatmul.msk.f32.gmra.mxu1 %vm605_vm0, %v449_v23 }
  0x39   : > { %1909 = vmatmul.msk.f32.gmra.mxu2 %vm605_vm0, %v457_v24 }
  0x3a   : > { %507 = vperm.xlu0 %1984, %v465_v25   ;;  %512 = vperm.xlu1 %1985, %v466_v26  }
  0x3c   : > { %517 = vperm.xlu2 %1986, %v467_v33  }
  0x40   : > { %1893 = vmatmul.msk.f32.gmra.mxu0 %vm605_vm0, %v441_v28  ;;  %1902 = vmatmul.msk.f32.gmra.mxu1 %vm605_vm0, %v450_v29 }
  0x41   : > { %1910 = vmatmul.msk.f32.gmra.mxu2 %vm605_vm0, %v458_v30 }
  0x42   : > { %522 = vperm.xlu0 %1984, %v468_v31   ;;  %567 = vperm.xlu1 %1985, %v477_v32  }
  0x44   : > { %572 = vperm.xlu2 %1986, %v478_v39  }
  0x48   : > { %1894 = vmatmul.msk.f32.gmra.mxu0 %vm605_vm0, %v442_v34  ;;  %1903 = vmatmul.msk.f32.gmra.mxu1 %vm605_vm0, %v451_v35 }
  0x49   : > { %1911 = vmatmul.msk.f32.gmra.mxu2 %vm605_vm0, %v459_v36 }
  0x4a   : > { %577 = vperm.xlu0 %1984, %v479_v37   ;;  %582 = vperm.xlu1 %1985, %v480_v38  }
  0x4c   : > { %587 = vperm.xlu2 %1986, %v481_v45  }
  0x50   : > { %1895 = vmatmul.msk.f32.gmra.mxu0 %vm605_vm0, %v443_v40  ;;  %1904 = vmatmul.msk.f32.gmra.mxu1 %vm605_vm0, %v452_v41 }
  0x51   : > { %1912 = vmatmul.msk.f32.gmra.mxu2 %vm605_vm0, %v460_v42 }
  0x52   : > { %592 = vperm.xlu0 %1984, %v482_v43   ;;  %597 = vperm.xlu1 %1985, %v483_v44  }
  0x54   : > { %602 = vperm.xlu2 %1986, %v484_v48  }
  0x58   : > { %1896 = vmatmul.msk.f32.gmra.mxu0 %vm605_vm0, %v444_v46  ;;  %1905 = vmatmul.msk.f32.gmra.mxu1 %vm605_vm0, %v453_v47 }
  0x60   : > { %1897 = vmatmul.msk.f32.gmra.mxu0 %vm605_vm0, %v445_v49 }
  0x76   : > { %v548_v57 = vpop.permute.xlu2 %547 }
  0x7e   : > { %v2398_v62 = vpop.permute.xlu2 %552 }
  0x86   : > { %v2404_v5 = vpop.permute.xlu2 %562 }
  0x8c   : > { %v2396_v50 = vpop.permute.xlu0 %527  ;;  %v538_v53 = vpop.permute.xlu1 %537 }
  0x8e   : > { %v503_v40 = vpop.permute.xlu2 %502 }
  0x94   : > { %v533_v56 = vpop.permute.xlu0 %532  ;;  %v543_v58 = vpop.permute.xlu1 %542 }
  0x9c   : > { %v488_v61 = vpop.permute.xlu0 %487  ;;  %v2400_v63 = vpop.permute.xlu1 %557 }
  0x9d   : > { %v698_v51 = vpop.f32.mrf.mxu0  ;;  %v725_v52 = vpop.f32.mrf.mxu1 }
  0x9e   : > { %v699_v2 = vadd.f32 %v698_v51, %v488_v61  ;;  %v2402_v3 = vadd.f32 %v725_v52, %v533_v56 }
  0xa0   : > { %v2406_v6 = vmul.f32 0.35355338, %v699_v2  ;;  %v794_v9 = vrot.slane %v2402_v3, 7  ;;  %v872_v11 = vrot.slane %v2402_v3, 1  ;;  %v911_v12 = vrot.slane %v2402_v3, 2 }
  0xa1   : > { %v950_v13 = vrot.slane %v2402_v3, 3 }
  0xa2   : > { %v778_v15 = vperm.slane %v2406_v6, 0 }
  0xa4   : > { %v493_v4 = vpop.permute.xlu0 %492  ;;  %v498_v10 = vpop.permute.xlu1 %497 }
  0xa5   : > { %v701_v54 = vpop.f32.mrf.mxu0  ;;  %v728_v55 = vpop.f32.mrf.mxu1 }
  0xa6   : > { %v702_v7 = vadd.f32 %v701_v54, %v493_v4  ;;  %v2412_v14 = vadd.f32 %v728_v55, %v538_v53 }
  0xa8   : > { %v2420_v21 = vmul.f32 0.35355338, %v702_v7  ;;  %v797_v29 = vrot.slane %v2412_v14, 6  ;;  %v834_v30 = vrot.slane %v2412_v14, 7  ;;  %v913_v32 = vrot.slane %v2412_v14, 1 }
  0xa9   : > { %v952_v33 = vrot.slane %v2412_v14, 2 }
  0xaa   : > { %v779_v36 = vperm.slane %v2420_v21, 0  ;;  %v825_v37 = vperm.slane %v2420_v21, 1 }
  0xac   : > { %v513_v46 = vpop.permute.xlu1 %512 }
  0xad   : > { %v704_v59 = vpop.f32.mrf.mxu0  ;;  %v731_v60 = vpop.f32.mrf.mxu1 }
  0xae   : > { %v705_v22 = vadd.f32 %v704_v59, %v498_v10  ;;  %v2429_v31 = vadd.f32 %v731_v60, %v543_v58  ;;  %v508_v60 = vpop.permute.xlu0 %507 }
  0xb0   : > { %v2438_v39 = vmul.f32 0.35355338, %v705_v22  ;;  %v800_v49 = vrot.slane %v2429_v31, 5  ;;  %v836_v51 = vrot.slane %v2429_v31, 6  ;;  %v875_v52 = vrot.slane %v2429_v31, 7 }
  0xb2   : > { %v780_v55 = vperm.slane %v2438_v39, 0 }
  0xb5   : > { %v707_v0 = vpop.f32.mrf.mxu0  ;;  %v734_v1 = vpop.f32.mrf.mxu1 }
  0xb6   : > { %v708_v45 = vadd.f32 %v707_v0, %v503_v40  ;;  %v2450_v54 = vadd.f32 %v734_v1, %v548_v57 }
  0xb8   : > { %v2458_v2 = vmul.f32 0.35355338, %v708_v45  ;;  %v803_v48 = vrot.slane %v2450_v54, 4  ;;  %v838_v47 = vrot.slane %v2450_v54, 5  ;;  %v916_v45 = vrot.slane %v2450_v54, 7 }
  0xba   : > { %v781_v10 = vperm.slane %v2458_v2, 0 }
  0xbd   : > { %v710_v8 = vpop.f32.mrf.mxu0  ;;  %v737_v23 = vpop.f32.mrf.mxu1 }
  0xbe   : > { %v711_v4 = vadd.f32 %v710_v8, %v508_v60  ;;  %v2468_v0 = vadd.f32 %v737_v23, %v2398_v62  ;;  %v877_v8 = vrot.slane %v2450_v54, 6  ;;  %v518_v23 = vpop.permute.xlu2 %517  ;;  %v523_v60 = vpop.permute.xlu0 %522 }
  0xc0   : > { %v2477_v44 = vmul.f32 0.35355338, %v711_v4  ;;  %v806_v25 = vrot.slane %v2468_v0, 3  ;;  %v840_v24 = vrot.slane %v2468_v0, 4  ;;  %v879_v4 = vrot.slane %v2468_v0, 5 }
  0xc1   : > { %v918_v7 = vrot.slane %v2468_v0, 6 }
  0xc5   : > { %v713_v41 = vpop.f32.mrf.mxu0  ;;  %v740_v22 = vpop.f32.mrf.mxu1 }
  0xc6   : > { %v714_v43 = vadd.f32 %v713_v41, %v513_v46  ;;  %v2490_v62 = vadd.f32 %v740_v22, %v2400_v63  ;;  %v782_v41 = vperm.slane %v2477_v44, 0 }
  0xc8   : > { %v2498_v20 = vmul.f32 0.35355338, %v714_v43  ;;  %v809_v26 = vrot.slane %v2490_v62, 2  ;;  %v842_v18 = vrot.slane %v2490_v62, 3  ;;  %v881_v28 = vrot.slane %v2490_v62, 4 }
  0xca   : > { %v783_v27 = vperm.slane %v2498_v20, 0 }
  0xcd   : > { %v716_v57 = vpop.f32.mrf.mxu0  ;;  %v743_v43 = vpop.f32.mrf.mxu1 }
  0xce   : > { %v717_v59 = vadd.f32 %v716_v57, %v518_v23  ;;  %v920_v57 = vrot.slane %v2490_v62, 5  ;;  %v2511_v22 = vadd.f32 %v743_v43, %v2404_v5 }
  0xd0   : > { %v2516_v56 = vmul.f32 0.35355338, %v717_v59  ;;  %v812_v59 = vrot.slane %v2511_v22, 1  ;;  %v844_v38 = vrot.slane %v2511_v22, 2  ;;  %v883_v35 = vrot.slane %v2511_v22, 3 }
  0xd1   : > { %v922_v34 = vrot.slane %v2511_v22, 4 }
  0xd2   : > { %v784_v5 = vperm.slane %v2516_v56, 0 }
  0xd5   : > { %v719_v58 = vpop.f32.mrf.mxu0 }
  0xd6   : > { %v720_v1 = vadd.f32 %v719_v58, %v523_v60 }
  0xd8   : > { %v2525_v63 = vmul.f32 0.35355338, %v720_v1 }
  0xda   : > { %v785_v58 = vperm.slane %v2525_v63, 0  ;;  %v831_v43 = vperm.slane %v2525_v63, 1 }
  0xdd   : > { %v722_v60 = vpop.f32.mrf.mxu0 }
  0xde   : > { %v2547_v23 = vadd.f32 %v722_v60, %v2396_v50 }
  0xe0   : > { %v796_v17 = vsel %vm795_vm1, %v794_v9, %v2547_v23  ;;  %v832_v42 = vrot.slane %v2547_v23, 1  ;;  %v871_v1 = vrot.slane %v2547_v23, 2  ;;  %v910_v50 = vrot.slane %v2547_v23, 3 }
  0xe1   : > { %v799_v60 = vsel %vm798_vm2, %v797_v29, %v796_v17  ;;  %v949_v46 = vrot.slane %v2547_v23, 4  ;;  %v988_v53 = vrot.slane %v2547_v23, 5  ;;  %v1027_v19 = vrot.slane %v2547_v23, 6 }
  0xe2   : > { %v802_v9 = vsel %vm801_vm3, %v800_v49, %v799_v60  ;;  %v833_v16 = vsel %vm795_vm1, %v2402_v3, %v832_v42  ;;  %v873_v40 = vsel %vm795_vm1, %v872_v11, %v871_v1  ;;  %v912_v17 = vsel %vm795_vm1, %v911_v12, %v910_v50 }
  0xe3   : > { %v805_v29 = vsel %vm804_vm4, %v803_v48, %v802_v9  ;;  %v835_v61 = vsel %vm798_vm2, %v834_v30, %v833_v16  ;;  %v874_v49 = vsel %vm798_vm2, %v2412_v14, %v873_v40  ;;  %v914_v42 = vsel %vm798_vm2, %v913_v32, %v912_v17 }
  0xe4   : > { %v808_v11 = vsel %vm807_vm5, %v806_v25, %v805_v29  ;;  %v837_v12 = vsel %vm801_vm3, %v836_v51, %v835_v61  ;;  %v876_v48 = vsel %vm801_vm3, %v875_v52, %v874_v49  ;;  %v915_v16 = vsel %vm801_vm3, %v2429_v31, %v914_v42 }
  0xe5   : > { %v811_v30 = vsel %vm810_vm6, %v809_v26, %v808_v11  ;;  %v839_v32 = vsel %vm804_vm4, %v838_v47, %v837_v12  ;;  %v878_v25 = vsel %vm804_vm4, %v877_v8, %v876_v48  ;;  %v917_v51 = vsel %vm804_vm4, %v916_v45, %v915_v16 }
  0xe6   : > { %v814_v52 = vsel %vm813_vm7, %v812_v59, %v811_v30  ;;  %v841_v61 = vsel %vm807_vm5, %v840_v24, %v839_v32  ;;  %v880_v26 = vsel %vm807_vm5, %v879_v4, %v878_v25  ;;  %v919_v47 = vsel %vm807_vm5, %v918_v7, %v917_v51 }
  0xe7   : > { %v816_v40 = vmul.f32 %v814_v52, %v778_v15  ;;  %v817_v8 = vmul.f32 %v814_v52, %v779_v36  ;;  %v818_v45 = vmul.f32 %v814_v52, %v780_v55  ;;  %v819_v24 = vmul.f32 %v814_v52, %v781_v10 }
  0xe8   : > { %v820_v59 = vmul.f32 %v814_v52, %v782_v41  ;;  %v821_v4 = vmul.f32 %v814_v52, %v783_v27  ;;  %v822_v1 = vmul.f32 %v814_v52, %v784_v5  ;;  %v823_v7 = vmul.f32 %v814_v52, %v785_v58 }
  0xe9   : > { %v843_v15 = vsel %vm810_vm6, %v842_v18, %v841_v61  ;;  %v882_v36 = vsel %vm810_vm6, %v881_v28, %v880_v26  ;;  %v921_v55 = vsel %vm810_vm6, %v920_v57, %v919_v47  ;;  %v951_v10 = vsel %vm795_vm1, %v950_v13, %v949_v46 }
  0xea   : > { %v845_v27 = vsel %vm813_vm7, %v844_v38, %v843_v15  ;;  %v2651_v18 = vsel %vm813_vm7, %v883_v35, %v882_v36  ;;  %v2656_v28 = vsel %vm813_vm7, %v922_v34, %v921_v55  ;;  %v953_v41 = vsel %vm798_vm2, %v952_v33, %v951_v10 }
  0xeb   : > { %v848_v13 = vmul.f32 %v845_v27, %v825_v37  ;;  %v3451_v46 = vperm.slane %v2438_v39, 1  ;;  %v3452_v57 = vperm.slane %v2458_v2, 1  ;;  %v3453_v35 = vperm.slane %v2477_v44, 1 }
  0xec   : > { %v3454_v50 = vperm.slane %v2498_v20, 1  ;;  %v3455_v60 = vperm.slane %v2516_v56, 1  ;;  %v854_v17 = vmul.f32 %v845_v27, %v831_v43  ;;  %v3456_v33 = vrot.slane %v2429_v31, 1 }
  0xed   : > { %v849_v38 = vmul.f32 %v845_v27, %v3451_v46  ;;  %v850_v5 = vmul.f32 %v845_v27, %v3452_v57  ;;  %v851_v58 = vmul.f32 %v845_v27, %v3453_v35  ;;  %v856_v29 = vadd.f32 %v848_v13, %v817_v8 }
  0xee   : > { %v852_v34 = vmul.f32 %v845_v27, %v3454_v50  ;;  %v853_v9 = vmul.f32 %v845_v27, %v3455_v60  ;;  %v955_v37 = vsel %vm801_vm3, %v3456_v33, %v953_v41  ;;  %v2684_v16 = vadd.f32 %v854_v17, %v823_v7  ;;  %v2709_v7 = vpop.f32.mrf.mxu2 }
  0xef   : > { %v857_v49 = vadd.f32 %v849_v38, %v818_v45  ;;  %v2676_v42 = vadd.f32 %v850_v5, %v819_v24  ;;  %v2678_v11 = vadd.f32 %v851_v58, %v820_v59  ;;  %v956_v30 = vsel %vm804_vm4, %v2450_v54, %v955_v37 }
  0xf0   : > { %v2680_v12 = vadd.f32 %v852_v34, %v821_v4  ;;  %v2682_v48 = vadd.f32 %v853_v9, %v822_v1  ;;  %v3457_v43 = vrot.slane %v2468_v0, 7  ;;  %v3458_v25 = vrot.slane %v2402_v3, 4 }
  0xf1   : > { %v3459_v52 = vrot.slane %v2402_v3, 5  ;;  %v1066_v26 = vrot.slane %v2547_v23, 7  ;;  %v3460_v47 = vrot.slane %v2490_v62, 6  ;;  %v3461_v45 = vrot.slane %v2412_v14, 3 }
  0xf2   : > { %v958_v32 = vsel %vm807_vm5, %v3457_v43, %v956_v30  ;;  %v990_v51 = vsel %vm795_vm1, %v3458_v25, %v988_v53  ;;  %v3462_v59 = vrot.slane %v2412_v14, 4  ;;  %v3463_v53 = vperm.slane %v2406_v6, 1 }
  0xf3   : > { %v1029_v61 = vsel %vm795_vm1, %v3459_v52, %v1027_v19  ;;  %v960_v8 = vsel %vm810_vm6, %v3460_v47, %v958_v32  ;;  %v992_v24 = vsel %vm798_vm2, %v3461_v45, %v990_v51  ;;  %v3464_v19 = vrot.slane %v2511_v22, 5 }
  0xf4   : > { %v1031_v4 = vsel %vm798_vm2, %v3462_v59, %v1029_v61  ;;  %v847_v1 = vmul.f32 %v845_v27, %v3463_v53  ;;  %v3465_v15 = vrot.slane %v2429_v31, 2  ;;  %v3466_v55 = vrot.slane %v2429_v31, 3 }
  0xf5   : > { %v2714_v23 = vsel %vm813_vm7, %v3464_v19, %v960_v8  ;;  %v3467_v41 = vrot.slane %v2402_v3, 6  ;;  %v3468_v27 = vrot.slane %v2450_v54, 1  ;;  %v3469_v38 = vrot.slane %v2450_v54, 2 }
  0xf6   : > { %v994_v36 = vsel %vm801_vm3, %v3465_v15, %v992_v24  ;;  %v1033_v10 = vsel %vm801_vm3, %v3466_v55, %v1031_v4  ;;  %v3470_v5 = vrot.slane %v2412_v14, 5  ;;  %v855_v58 = vadd.f32 %v847_v1, %v816_v40 }
  0xf7   : > { %v1068_v13 = vsel %vm795_vm1, %v3467_v41, %v1066_v26  ;;  %v996_v46 = vsel %vm804_vm4, %v3468_v27, %v994_v36  ;;  %v1035_v57 = vsel %vm804_vm4, %v3469_v38, %v1033_v10  ;;  %v3471_v3 = vrot.slane %v2468_v0, 1 }
  0xf8   : > { %v1070_v35 = vsel %vm798_vm2, %v3470_v5, %v1068_v13  ;;  %v997_v50 = vsel %vm807_vm5, %v2468_v0, %v996_v46  ;;  %v3472_v60 = vrot.slane %v2429_v31, 4  ;;  %v3473_v17 = vperm.slane %v2406_v6, 2 }
  0xf9   : > { %v1037_v34 = vsel %vm807_vm5, %v3471_v3, %v1035_v57  ;;  %v3474_v14 = vrot.slane %v2490_v62, 7  ;;  %v3475_v30 = vrot.slane %v2450_v54, 3  ;;  %v3476_v32 = vperm.slane %v2406_v6, 3 }
  0xfa   : > { %v1072_v9 = vsel %vm801_vm3, %v3472_v60, %v1070_v35  ;;  %v886_v33 = vmul.f32 %v2651_v18, %v3473_v17  ;;  %v1038_v40 = vsel %vm810_vm6, %v2490_v62, %v1037_v34  ;;  %v3477_v25 = vrot.slane %v2511_v22, 6 }
  0xfb   : > { %v999_v37 = vsel %vm810_vm6, %v3474_v14, %v997_v50  ;;  %v1074_v43 = vsel %vm804_vm4, %v3475_v30, %v1072_v9  ;;  %v925_v31 = vmul.f32 %v2656_v28, %v3476_v32  ;;  %v3478_v52 = vrot.slane %v2511_v22, 7 }
  0xfc   : > { %v2759_v51 = vsel %vm813_vm7, %v3477_v25, %v999_v37  ;;  %v3479_v26 = vrot.slane %v2468_v0, 2  ;;  %v894_v47 = vadd.f32 %v886_v33, %v855_v58  ;;  %v3480_v8 = vrot.slane %v2490_v62, 1 }
  0xfd   : > { %v2764_v61 = vsel %vm813_vm7, %v3478_v52, %v1038_v40  ;;  %v3481_v24 = vperm.slane %v2406_v6, 4  ;;  %v3482_v4 = vperm.slane %v2406_v6, 5  ;;  %v3483_v1 = vperm.slane %v2406_v6, 6  ;;  %v2821_v40 = vpop.f32.mrf.mxu2 }
  0xfe   : > { %v1076_v54 = vsel %vm807_vm5, %v3479_v26, %v1074_v43  ;;  %v933_v62 = vadd.f32 %v925_v31, %v894_v47  ;;  %v3484_v15 = vperm.slane %v2420_v21, 2  ;;  %v3485_v55 = vperm.slane %v2420_v21, 3 }
  0xff   : > { %v1078_v45 = vsel %vm810_vm6, %v3480_v8, %v1076_v54  ;;  %v964_v59 = vmul.f32 %v2714_v23, %v3481_v24  ;;  %v1003_v53 = vmul.f32 %v2759_v51, %v3482_v4  ;;  %v1042_v19 = vmul.f32 %v2764_v61, %v3483_v1 }
 0x100   : > { %v2783_v0 = vsel %vm813_vm7, %v2511_v22, %v1078_v45  ;;  %v887_v36 = vmul.f32 %v2651_v18, %v3484_v15  ;;  %v926_v10 = vmul.f32 %v2656_v28, %v3485_v55  ;;  %v3486_v41 = vperm.slane %v2406_v6, 7 }
 0x101   : > { %v3487_v27 = vperm.slane %v2420_v21, 4  ;;  %v3488_v22 = vperm.slane %v2420_v21, 5  ;;  %v3489_v57 = vperm.slane %v2420_v21, 6  ;;  %v972_v35 = vadd.f32 %v964_v59, %v933_v62 }
 0x102   : > { %v1081_v13 = vmul.f32 %v2783_v0, %v3486_v41  ;;  %v895_v58 = vadd.f32 %v887_v36, %v856_v29  ;;  %v3490_v50 = vperm.slane %v2420_v21, 7  ;;  %v3491_v3 = vperm.slane %v2438_v39, 2 }
 0x103   : > { %v965_v46 = vmul.f32 %v2714_v23, %v3487_v27  ;;  %v1004_v38 = vmul.f32 %v2759_v51, %v3488_v22  ;;  %v1043_v5 = vmul.f32 %v2764_v61, %v3489_v57  ;;  %v3492_v60 = vperm.slane %v2438_v39, 3 }
 0x104   : > { %v1082_v6 = vmul.f32 %v2783_v0, %v3490_v50  ;;  %v888_v34 = vmul.f32 %v2651_v18, %v3491_v3  ;;  %v3493_v17 = vperm.slane %v2438_v39, 4  ;;  %v3494_v14 = vperm.slane %v2438_v39, 5 }
 0x105   : > { %v927_v9 = vmul.f32 %v2656_v28, %v3492_v60  ;;  %v3495_v21 = vperm.slane %v2438_v39, 6  ;;  %v1011_v30 = vadd.f32 %v1003_v53, %v972_v35  ;;  %v934_v43 = vadd.f32 %v926_v10, %v895_v58 }
 0x106   : > { %v966_v33 = vmul.f32 %v2714_v23, %v3493_v17  ;;  %v1005_v29 = vmul.f32 %v2759_v51, %v3494_v14  ;;  %v896_v32 = vadd.f32 %v888_v34, %v857_v49  ;;  %v3496_v31 = vperm.slane %v2438_v39, 7 }
 0x107   : > { %v1044_v37 = vmul.f32 %v2764_v61, %v3495_v21  ;;  %v3497_v52 = vperm.slane %v2458_v2, 2  ;;  %v3498_v54 = vperm.slane %v2458_v2, 3  ;;  %v3499_v8 = vperm.slane %v2458_v2, 4 }
 0x108   : > { %v1083_v25 = vmul.f32 %v2783_v0, %v3496_v31  ;;  %v3500_v24 = vperm.slane %v2458_v2, 5  ;;  %v1050_v59 = vadd.f32 %v1042_v19, %v1011_v30  ;;  %v973_v39 = vadd.f32 %v965_v46, %v934_v43 }
 0x109   : > { %v889_v26 = vmul.f32 %v2651_v18, %v3497_v52  ;;  %v928_v47 = vmul.f32 %v2656_v28, %v3498_v54  ;;  %v967_v45 = vmul.f32 %v2714_v23, %v3499_v8  ;;  %v935_v4 = vadd.f32 %v927_v9, %v896_v32  ;;  %v2880_v8 = vpop.f32.mrf.mxu2 }
 0x10a   : > { %v1006_v49 = vmul.f32 %v2759_v51, %v3500_v24  ;;  %v3501_v53 = vperm.slane %v2458_v2, 6  ;;  %v3502_v15 = vperm.slane %v2458_v2, 7  ;;  %v3503_v55 = vperm.slane %v2477_v44, 2 }
 0x10b   : > { %v897_v62 = vadd.f32 %v889_v26, %v2676_v42  ;;  %v3504_v41 = vperm.slane %v2477_v44, 3  ;;  %v2851_v27 = vadd.f32 %v1081_v13, %v1050_v59  ;;  %v1012_v46 = vadd.f32 %v1004_v38, %v973_v39 }
 0x10c   : > { %v1045_v1 = vmul.f32 %v2764_v61, %v3501_v53  ;;  %v1084_v36 = vmul.f32 %v2783_v0, %v3502_v15  ;;  %v890_v10 = vmul.f32 %v2651_v18, %v3503_v55  ;;  %v974_v22 = vadd.f32 %v966_v33, %v935_v4 }
 0x10d   : > { %v929_v19 = vmul.f32 %v2656_v28, %v3504_v41  ;;  %v3505_v57 = vperm.slane %v2477_v44, 4  ;;  %v936_v35 = vadd.f32 %v928_v47, %v897_v62  ;;  %v3506_v58 = vperm.slane %v2477_v44, 5 }
 0x10e   : > { %v898_v2 = vadd.f32 %v890_v10, %v2678_v11  ;;  %v3507_v3 = vperm.slane %v2477_v44, 6  ;;  %v1098_v13 = vsel %vm1097_vm8, %v2851_v27, -inf  ;;  %v1051_v38 = vadd.f32 %v1043_v5, %v1012_v46 }
 0x10f   : > { %v968_v42 = vmul.f32 %v2714_v23, %v3505_v57  ;;  %v1007_v50 = vmul.f32 %v2759_v51, %v3506_v58  ;;  %v1013_v60 = vadd.f32 %v1005_v29, %v974_v22  ;;  %v3508_v9 = vperm.slane %v2477_v44, 7 }
 0x110   : > { %v1046_v34 = vmul.f32 %v2764_v61, %v3507_v3  ;;  %v1099_v33 = vrot.slane %v1098_v13, 4  ;;  %v975_v14 = vadd.f32 %v967_v45, %v936_v35  ;;  %v937_v11 = vadd.f32 %v929_v19, %v898_v2 }
 0x111   : > { %v1085_v17 = vmul.f32 %v2783_v0, %v3508_v9  ;;  %v3509_v21 = vperm.slane %v2498_v20, 2  ;;  %v2871_v43 = vadd.f32 %v1082_v6, %v1051_v38  ;;  %v1052_v32 = vadd.f32 %v1044_v37, %v1013_v60 }
 0x112   : > { %v3510_v31 = vperm.slane %v2498_v20, 3  ;;  %v3511_v5 = vperm.slane %v2498_v20, 4  ;;  %v1100_v29 = vmax.f32 %v1098_v13, %v1099_v33  ;;  %v1014_v26 = vadd.f32 %v1006_v49, %v975_v14 }
 0x113   : > { %v891_v30 = vmul.f32 %v2651_v18, %v3509_v21  ;;  %v976_v54 = vadd.f32 %v968_v42, %v937_v11  ;;  %v1105_v6 = vsel %vm1097_vm8, %v2871_v43, -inf  ;;  %v2884_v45 = vadd.f32 %v1083_v25, %v1052_v32 }
 0x114   : > { %v930_v52 = vmul.f32 %v2656_v28, %v3510_v31  ;;  %v969_v44 = vmul.f32 %v2714_v23, %v3511_v5  ;;  %v3512_v37 = vperm.slane %v2498_v20, 5  ;;  %v3513_v59 = vperm.slane %v2498_v20, 6 }
 0x115   : > { %v899_v47 = vadd.f32 %v891_v30, %v2680_v12  ;;  %v1101_v4 = vrot.slane %v1100_v29, 2  ;;  %v1106_v49 = vrot.slane %v1105_v6, 4  ;;  %v1053_v53 = vadd.f32 %v1045_v1, %v1014_v26  ;;  %v2919_v26 = vpop.f32.mrf.mxu2 }
 0x116   : > { %v1008_v24 = vmul.f32 %v2759_v51, %v3512_v37  ;;  %v1047_v39 = vmul.f32 %v2764_v61, %v3513_v59  ;;  %v1015_v62 = vadd.f32 %v1007_v50, %v976_v54  ;;  %v1112_v12 = vsel %vm1097_vm8, %v2884_v45, -inf }
 0x117   : > { %v938_v15 = vadd.f32 %v930_v52, %v899_v47  ;;  %v3514_v55 = vperm.slane %v2498_v20, 7  ;;  %v3515_v10 = vperm.slane %v2516_v56, 2  ;;  %v1102_v19 = vmax.f32 %v1100_v29, %v1101_v4 }
 0x118   : > { %v1107_v46 = vmax.f32 %v1105_v6, %v1106_v49  ;;  %v1113_v22 = vrot.slane %v1112_v12, 4  ;;  %v2900_v57 = vadd.f32 %v1084_v36, %v1053_v53  ;;  %v1054_v42 = vadd.f32 %v1046_v34, %v1015_v62 }
 0x119   : > { %v1086_v25 = vmul.f32 %v2783_v0, %v3514_v55  ;;  %v892_v41 = vmul.f32 %v2651_v18, %v3515_v10  ;;  %v977_v1 = vadd.f32 %v969_v44, %v938_v15  ;;  %v3516_v2 = vperm.slane %v2516_v56, 3 }
 0x11a   : > { %v1103_v20 = vrot.slane %v1102_v19, 1  ;;  %v1108_v50 = vrot.slane %v1107_v46, 2  ;;  %v1114_v3 = vmax.f32 %v1112_v12, %v1113_v22  ;;  %v1119_v13 = vsel %vm1097_vm8, %v2900_v57, -inf }
 0x11b   : > { %v900_v35 = vadd.f32 %v892_v41, %v2682_v48  ;;  %v931_v58 = vmul.f32 %v2656_v28, %v3516_v2  ;;  %v1120_v38 = vrot.slane %v1119_v13, 4  ;;  %v2908_v60 = vadd.f32 %v1085_v17, %v1054_v42 }
 0x11c   : > { %v1016_v9 = vadd.f32 %v1008_v24, %v977_v1  ;;  %v1104_v33 = vmax.f32 %v1102_v19, %v1103_v20  ;;  %v1109_v34 = vmax.f32 %v1107_v46, %v1108_v50  ;;  %v1115_v14 = vrot.slane %v1114_v3, 2 }
 0x11d   : > { %v939_v36 = vadd.f32 %v931_v58, %v900_v35  ;;  %v3517_v48 = vperm.slane %v2516_v56, 4  ;;  %v1121_v21 = vmax.f32 %v1119_v13, %v1120_v38  ;;  %v1126_v30 = vsel %vm1097_vm8, %v2908_v60, -inf }
 0x11e   : > { %v1055_v32 = vadd.f32 %v1047_v39, %v1016_v9  ;;  %v3518_v31 = vperm.slane %v2516_v56, 5  ;;  %v1154_v17 = vsub.f32 %v2851_v27, %v1104_v33  ;;  %v1110_v5 = vrot.slane %v1109_v34, 1 }
 0x11f   : > { %v970_v11 = vmul.f32 %v2714_v23, %v3517_v48  ;;  %v1116_v44 = vmax.f32 %v1114_v3, %v1115_v14  ;;  %v1127_v29 = vrot.slane %v1126_v30, 4  ;;  %v1122_v54 = vrot.slane %v1121_v21, 2 }
 0x120   : > { %v1009_v52 = vmul.f32 %v2759_v51, %v3518_v31  ;;  %v2921_v47 = vadd.f32 %v1086_v25, %v1055_v32  ;;  %v3519_v37 = vperm.slane %v2516_v56, 6  ;;  %v1162_v59 = vmul.f32 1.442695, %v1154_v17 }
 0x121   : > { %v978_v6 = vadd.f32 %v970_v11, %v939_v36  ;;  %v1111_v39 = vmax.f32 %v1109_v34, %v1110_v5  ;;  %v1117_v4 = vrot.slane %v1116_v44, 1  ;;  %v1128_v49 = vmax.f32 %v1126_v30, %v1127_v29  ;;  %v2945_v36 = vpop.permute.xlu1 %567  ;;  %v2957_v30 = vpop.f32.mrf.mxu2 }
 0x122   : > { %v1048_v24 = vmul.f32 %v2764_v61, %v3519_v37  ;;  %v1123_v53 = vmax.f32 %v1121_v21, %v1122_v54  ;;  %v1133_v27 = vsel %vm1097_vm8, %v2921_v47, -inf  ;;  %v3520_v12 = vperm.slane %v2516_v56, 7 }
 0x123   : > { %v1017_v62 = vadd.f32 %v1009_v52, %v978_v6  ;;  %1994 = vpow2.f32 %v1162_v59  ;;  %v1155_v55 = vsub.f32 %v2871_v43, %v1111_v39  ;;  %v1118_v25 = vmax.f32 %v1116_v44, %v1117_v4 }
 0x124   : > { %v1087_v15 = vmul.f32 %v2783_v0, %v3520_v12  ;;  %v1129_v10 = vrot.slane %v1128_v49, 2  ;;  %v1124_v41 = vrot.slane %v1123_v53, 1  ;;  %v1134_v19 = vrot.slane %v1133_v27, 4 }
 0x125   : > { %v1056_v46 = vadd.f32 %v1048_v24, %v1017_v62  ;;  %v3521_v22 = vperm.slane %v2525_v63, 2  ;;  %v1164_v1 = vmul.f32 1.442695, %v1155_v55  ;;  %v1156_v35 = vsub.f32 %v2884_v45, %v1118_v25  ;;  %v578_v55 = vpop.permute.xlu0 %577 }
 0x126   : > { %v1130_v2 = vmax.f32 %v1128_v49, %v1129_v10  ;;  %v3522_v56 = vperm.slane %v2525_v63, 3  ;;  %v1125_v20 = vmax.f32 %v1123_v53, %v1124_v41  ;;  %v1135_v50 = vmax.f32 %v1133_v27, %v1134_v19 }
 0x127   : > { %v893_v42 = vmul.f32 %v2651_v18, %v3521_v22  ;;  %v2939_v43 = vadd.f32 %v1087_v15, %v1056_v46  ;;  %v3523_v3 = vperm.slane %v2525_v63, 4  ;;  %1996 = vpow2.f32 %v1164_v1 }
 0x128   : > { %v932_v58 = vmul.f32 %v2656_v28, %v3522_v56  ;;  %v1166_v38 = vmul.f32 1.442695, %v1156_v35  ;;  %v1131_v9 = vrot.slane %v1130_v2, 1  ;;  %v1157_v45 = vsub.f32 %v2900_v57, %v1125_v20 }
 0x129   : > { %v971_v13 = vmul.f32 %v2714_v23, %v3523_v3  ;;  %v901_v18 = vadd.f32 %v893_v42, %v2684_v16  ;;  %v1136_v33 = vrot.slane %v1135_v50, 2  ;;  %v1140_v28 = vsel %vm1097_vm8, %v2939_v43, -inf  ;;  %v2953_v48 = vpop.eup %1994  ;;  %v2955_v23 = vpop.permute.xlu2 %572 }
 0x12a   : > { %v3524_v34 = vperm.slane %v2525_v63, 5  ;;  %1998 = vpow2.f32 %v1166_v38  ;;  %v1132_v11 = vmax.f32 %v1130_v2, %v1131_v9  ;;  %v1141_v21 = vrot.slane %v1140_v28, 4  ;;  %v583_v22 = vpop.permute.xlu1 %582 }
 0x12b   : > { %v940_v16 = vadd.f32 %v932_v58, %v901_v18  ;;  %v1178_v57 = vsel %vm1097_vm8, %v2953_v48, 0.0  ;;  %v1168_v32 = vmul.f32 1.442695, %v1157_v45  ;;  %v1137_v31 = vmax.f32 %v1135_v50, %v1136_v33 }
 0x12c   : > { %v1010_v14 = vmul.f32 %v2759_v51, %v3524_v34  ;;  %v3525_v52 = vperm.slane %v2525_v63, 6  ;;  %v1179_v51 = vrot.slane %v1178_v57, 4  ;;  %v1158_v5 = vsub.f32 %v2908_v60, %v1132_v11 }
 0x12d   : > { %v1142_v44 = vmax.f32 %v1140_v28, %v1141_v21  ;;  %v979_v29 = vadd.f32 %v971_v13, %v940_v16  ;;  %2000 = vpow2.f32 %v1168_v32  ;;  %v1138_v54 = vrot.slane %v1137_v31, 1  ;;  %v2968_v24 = vpop.eup %1996 }
 0x12e   : > { %v1049_v17 = vmul.f32 %v2764_v61, %v3525_v52  ;;  %v3526_v6 = vperm.slane %v2525_v63, 7  ;;  %v1180_v59 = vadd.f32 %v1179_v51, %v1178_v57  ;;  %v1170_v39 = vmul.f32 1.442695, %v1158_v5  ;;  %v593_v5 = vpop.permute.xlu0 %592 }
 0x12f   : > { %v1143_v4 = vrot.slane %v1142_v44, 2  ;;  %v1018_v49 = vadd.f32 %v1010_v14, %v979_v29  ;;  %v1185_v61 = vsel %vm1097_vm8, %v2968_v24, 0.0  ;;  %v1139_v53 = vmax.f32 %v1137_v31, %v1138_v54 }
 0x130   : > { %v1088_v37 = vmul.f32 %v2783_v0, %v3526_v6  ;;  %v2972_v27 = vpop.eup %1998  ;;  %v1181_v60 = vrot.slane %v1180_v59, 2  ;;  %v1186_v62 = vrot.slane %v1185_v61, 4  ;;  %2002 = vpow2.f32 %v1170_v39 }
 0x131   : > { %v1144_v12 = vmax.f32 %v1142_v44, %v1143_v4  ;;  %v1192_v63 = vsel %vm1097_vm8, %v2972_v27, 0.0  ;;  %v1159_v0 = vsub.f32 %v2921_v47, %v1139_v53  ;;  %v1057_v15 = vadd.f32 %v1049_v17, %v1018_v49  ;;  %v588_v35 = vpop.permute.xlu2 %587  ;;  %v764_v47 = vpop.f32.mrf.mxu2 }
 0x132   : > { %v1182_v25 = vadd.f32 %v1181_v60, %v1180_v59  ;;  %v1187_v10 = vadd.f32 %v1186_v62, %v1185_v61  ;;  %v1193_v41 = vrot.slane %v1192_v63, 4  ;;  %v3002_v44 = vadd.f32 %v2880_v8, %v583_v22  ;;  %v598_v54 = vpop.permute.xlu1 %597  ;;  %v746_v61 = vpop.f32.mrf.mxu1 }
 0x133   : > { %v1145_v19 = vrot.slane %v1144_v12, 1  ;;  %v2977_v46 = vpop.eup %2000  ;;  %v1172_v42 = vmul.f32 1.442695, %v1159_v0  ;;  %v2979_v1 = vadd.f32 %v1088_v37, %v1057_v15  ;;  %v3005_v29 = vadd.f32 %v2821_v40, %v578_v55 }
 0x134   : > { %v1183_v2 = vrot.slane %v1182_v25, 1  ;;  %v1188_v56 = vrot.slane %v1187_v10, 2  ;;  %v1194_v58 = vadd.f32 %v1193_v41, %v1192_v63  ;;  %v1199_v20 = vsel %vm1097_vm8, %v2977_v46, 0.0 }
 0x135   : > { %v1200_v50 = vrot.slane %v1199_v20, 4  ;;  %2004 = vpow2.f32 %v1172_v42  ;;  %v1146_v3 = vmax.f32 %v1144_v12, %v1145_v19  ;;  %v1147_v57 = vsel %vm1097_vm8, %v2979_v1, -inf }
 0x136   : > { %v2983_v13 = vpop.eup %2002  ;;  %v2985_v38 = vadd.f32 %v1183_v2, %v1182_v25  ;;  %v1189_v9 = vadd.f32 %v1188_v56, %v1187_v10  ;;  %v1195_v18 = vrot.slane %v1194_v58, 2  ;;  %v3013_v49 = vadd.f32 %v2919_v26, %v588_v35 }
 0x137   : > { %v1201_v45 = vadd.f32 %v1200_v50, %v1199_v20  ;;  %v1206_v33 = vsel %vm1097_vm8, %v2983_v13, 0.0  ;;  %v1160_v28 = vsub.f32 %v2939_v43, %v1146_v3  ;;  %v2999_v43 = vadd.f32 %v2709_v7, %v2955_v23 }
 0x138   : > { %2006 = vrcp.f32 %v2985_v38  ;;  %v1190_v34 = vrot.slane %v1189_v9, 1  ;;  %v1196_v14 = vadd.f32 %v1195_v18, %v1194_v58  ;;  %v1207_v21 = vrot.slane %v1206_v33, 4 }
 0x139   : > { %v1202_v11 = vrot.slane %v1201_v45, 2  ;;  %v1174_v16 = vmul.f32 1.442695, %v1160_v28  ;;  %v603_v59 = vpop.permute.xlu2 %602  ;;  %v1148_v23 = vrot.slane %v1147_v57, 4  ;;  %v3016_v8 = vadd.f32 %v2957_v30, %v593_v5  ;;  %v767_v40 = vpop.f32.mrf.mxu2 }
 0x13a   : > { %v2995_v31 = vadd.f32 %v1190_v34, %v1189_v9  ;;  %v1197_v52 = vrot.slane %v1196_v14, 1  ;;  %v1208_v51 = vadd.f32 %v1207_v21, %v1206_v33  ;;  %v3019_v60 = vadd.f32 %v764_v47, %v598_v54 }
 0x13b   : > { %v2993_v32 = vpop.eup %2004  ;;  %v1203_v17 = vadd.f32 %v1202_v11, %v1201_v45  ;;  %v1243_v62 = vand.u32 2147483647, %v2985_v38  ;;  %v1245_v0 = vand.u32 2147483648, %v2985_v38  ;;  %v3026_v30 = vadd.f32 %v767_v40, %v603_v59 }
 0x13c   : > { %2008 = vrcp.f32 %v2995_v31  ;;  %v1213_v6 = vsel %vm1097_vm8, %v2993_v32, 0.0  ;;  %v3010_v39 = vadd.f32 %v1197_v52, %v1196_v14  ;;  %v1209_v7 = vrot.slane %v1208_v51, 2 }
 0x13d   : > { %v1204_v4 = vrot.slane %v1203_v17, 1  ;;  %2010 = vpow2.f32 %v1174_v16  ;;  %v1214_v12 = vrot.slane %v1213_v6, 4  ;;  %v3029_v55 = vadd.f32 %v746_v61, %v2945_v36 }
 0x13e   : > { %v2007_v37 = vpop.eup %2006  ;;  %2012 = vrcp.f32 %v3010_v39  ;;  %v1210_v15 = vadd.f32 %v1209_v7, %v1208_v51  ;;  %v1258_v25 = vand.u32 2147483647, %v2995_v31  ;;  %v1149_v10 = vmax.f32 %v1147_v57, %v1148_v23 }
 0x13f   : > { %v1235_v53 = vmul.f32 %v2007_v37, %v2985_v38  ;;  %v3024_v26 = vadd.f32 %v1204_v4, %v1203_v17  ;;  %vm1240_vm9 = vweird.f32 %v2007_v37  ;;  %v1260_v22 = vand.u32 2147483648, %v2995_v31 }
 0x140   : > { %vm1239_vm10 = vweird.f32 %v2985_v38  ;;  %v1211_v35 = vrot.slane %v1210_v15, 1  ;;  %v1215_v2 = vadd.f32 %v1214_v12, %v1213_v6  ;;  %vm1244_vm11 = vcmp.eq.f32.partialorder %v1243_v62, 8.507059e+37 }
 0x141   : > { %v1236_v63 = vsub.f32 1.0, %v1235_v53  ;;  %2014 = vrcp.f32 %v3024_v26  ;;  %v1246_v58 = vor.u32 1.1754944e-38, %v1245_v0  ;;  %v1275_v20 = vand.u32 2147483648, %v3010_v39  ;;  %vm1241_vm12 = vmor %vm1239_vm10, %vm1240_vm9 }
 0x142   : > { %v3032_v41 = vpop.eup %2008  ;;  %vm1254_vm13 = vweird.f32 %v2995_v31  ;;  %v3045_v3 = vadd.f32 %v1211_v35, %v1210_v15  ;;  %v1150_v38 = vrot.slane %v1149_v10, 2  ;;  %vm3047_vm14 = vcmp.eq.f32.partialorder %v1258_v25, 8.507059e+37 }
 0x143   : > { %v1237_v19 = vmul.f32 %v2007_v37, %v1236_v63  ;;  %v1250_v42 = vmul.f32 %v3032_v41, %v2995_v31  ;;  %v3039_v36 = vpop.eup %2010  ;;  %v1261_v45 = vor.u32 1.1754944e-38, %v1260_v22  ;;  %v1290_v28 = vand.u32 2147483648, %v3024_v26 }
 0x144   : > { %v3042_v47 = vpop.eup %2012  ;;  %2016 = vrcp.f32 %v3045_v3  ;;  %v1216_v11 = vrot.slane %v1215_v2, 2  ;;  %v1273_v57 = vand.u32 2147483647, %v3010_v39  ;;  %v3060_v52 = vor.u32 1.1754944e-38, %v1275_v20 }
 0x145   : > { %v1238_v56 = vadd.f32 %v2007_v37, %v1237_v19  ;;  %v1251_v50 = vsub.f32 1.0, %v1250_v42  ;;  %v1265_v33 = vmul.f32 %v3042_v47, %v3010_v39  ;;  %v3064_v17 = vsel %vm1097_vm8, %v3039_v36, 0.0 }
 0x146   : > { %vm1255_vm15 = vweird.f32 %v3032_v41  ;;  %v1288_v5 = vand.u32 2147483647, %v3024_v26  ;;  %v3068_v54 = vmax.f32 %v1149_v10, %v1150_v38  ;;  %v3073_v7 = vor.u32 1.1754944e-38, %v1290_v28 }
 0x147   : > { %v1242_v9 = vsel %vm1241_vm12, %v2007_v37, %v1238_v56  ;;  %v1252_v14 = vmul.f32 %v3032_v41, %v1251_v50  ;;  %v3056_v21 = vpop.eup %2014  ;;  %v1266_v51 = vsub.f32 1.0, %v1265_v33  ;;  %v1217_v23 = vadd.f32 %v1216_v11, %v1215_v2  ;;  %vm1256_vm3 = vmor %vm1254_vm13, %vm1255_vm15 }
 0x148   : > { %v1247_v34 = vsel %vm1244_vm11, %v1246_v58, %v1242_v9  ;;  %v1280_v4 = vmul.f32 %v3056_v21, %v3024_v26  ;;  %v1221_v40 = vrot.slane %v3064_v17, 4  ;;  %vm1269_vm1 = vweird.f32 %v3010_v39 }
 0x149   : > { %v1248_v16 = vmul.f32 %v2953_v48, %v1247_v34  ;;  %v1253_v48 = vadd.f32 %v3032_v41, %v1252_v14  ;;  %vm1270_vm2 = vweird.f32 %v3042_v47  ;;  %v1303_v15 = vand.u32 2147483647, %v3045_v3 }
 0x14a   : > { %v3080_v12 = vpop.eup %2016  ;;  %v1305_v25 = vand.u32 2147483648, %v3045_v3  ;;  %v1267_v42 = vmul.f32 %v3042_v47, %v1266_v51  ;;  %vm3091_vm4 = vcmp.eq.f32.partialorder %v1273_v57, 8.507059e+37  ;;  %v1281_v56 = vsub.f32 1.0, %v1280_v4  ;;  %vm1271_vm7 = vmor %vm1269_vm1, %vm1270_vm2 }
 0x14b   : > { %v1354_v6 = vperm.slane %v1248_v16, 0  ;;  %v1370_v37 = vperm.slane %v1248_v16, 1  ;;  %v1394_v59 = vperm.slane %v1248_v16, 2  ;;  %v1418_v62 = vperm.slane %v1248_v16, 3 }
 0x14c   : > { %v1442_v63 = vperm.slane %v1248_v16, 4  ;;  %v1466_v0 = vperm.slane %v1248_v16, 5  ;;  %v1257_v22 = vsel %vm1256_vm3, %v3032_v41, %v1253_v48  ;;  %v1490_v2 = vperm.slane %v1248_v16, 6 }
 0x14d   : > { %v1362_v61 = vmul.f32 %v1354_v6, %v3029_v55  ;;  %v1378_v53 = vmul.f32 %v1370_v37, %v2999_v43  ;;  %v1402_v19 = vmul.f32 %v1394_v59, %v3005_v29  ;;  %v1262_v31 = vsel %vm3047_vm14, %v1261_v45, %v1257_v22 }
 0x14e   : > { %vm1285_vm5 = vweird.f32 %v3056_v21  ;;  %v1218_v58 = vrot.slane %v1217_v23, 1  ;;  %v1426_v50 = vmul.f32 %v1418_v62, %v3002_v44  ;;  %v3100_v38 = vmul.f32 %v2968_v24, %v1262_v31 }
 0x14f   : > { %v1386_v10 = vadd.f32 %v1378_v53, %v1362_v61  ;;  %v1295_v41 = vmul.f32 %v3080_v12, %v3045_v3  ;;  %v1450_v9 = vmul.f32 %v1442_v63, %v3013_v49  ;;  %v1474_v33 = vmul.f32 %v1466_v0, %v3016_v8 }
 0x150   : > { %v1514_v28 = vperm.slane %v1248_v16, 7  ;;  %v1268_v18 = vadd.f32 %v3042_v47, %v1267_v42  ;;  %vm1284_vm6 = vweird.f32 %v3024_v26  ;;  %v1355_v34 = vperm.slane %v3100_v38, 0 }
 0x151   : > { %v1410_v20 = vadd.f32 %v1402_v19, %v1386_v10  ;;  %v1371_v14 = vperm.slane %v3100_v38, 1  ;;  %v1395_v24 = vperm.slane %v3100_v38, 2  ;;  %v1498_v11 = vmul.f32 %v1490_v2, %v3019_v60  ;;  %vm3148_vm12 = vmor %vm1284_vm6, %vm1285_vm5 }
 0x152   : > { %v1419_v57 = vperm.slane %v3100_v38, 3  ;;  %v1282_v51 = vmul.f32 %v3056_v21, %v1281_v56  ;;  %v3114_v6 = vadd.f32 %v1218_v58, %v1217_v23  ;;  %v1363_v37 = vmul.f32 %v1355_v34, %v3029_v55 }
 0x153   : > { %v1434_v45 = vadd.f32 %v1426_v50, %v1410_v20  ;;  %v1379_v59 = vmul.f32 %v1371_v14, %v2999_v43  ;;  %v1296_v48 = vsub.f32 1.0, %v1295_v41  ;;  %v1522_v4 = vmul.f32 %v1514_v28, %v3026_v30 }
 0x154   : > { %v1443_v61 = vperm.slane %v3100_v38, 4  ;;  %v1467_v53 = vperm.slane %v3100_v38, 5  ;;  %vm1300_vm9 = vweird.f32 %v3080_v12  ;;  %v1403_v63 = vmul.f32 %v1395_v24, %v3005_v29 }
 0x155   : > { %v1458_v16 = vadd.f32 %v1450_v9, %v1434_v45  ;;  %v1387_v62 = vadd.f32 %v1379_v59, %v1363_v37  ;;  %v1272_v0 = vsel %vm1271_vm7, %v3042_v47, %v1268_v18  ;;  %vm3128_vm10 = vcmp.eq.f32.partialorder %v1288_v5, 8.507059e+37 }
 0x156   : > { %vm1299_vm11 = vweird.f32 %v3045_v3  ;;  %v1427_v19 = vmul.f32 %v1419_v57, %v3002_v44  ;;  %v1277_v39 = vsel %vm3091_vm4, %v3060_v52, %v1272_v0  ;;  %v1283_v22 = vadd.f32 %v3056_v21, %v1282_v51 }
 0x157   : > { %v1482_v23 = vadd.f32 %v1474_v33, %v1458_v16  ;;  %2018 = vrcp.f32 %v3114_v6  ;;  %v1411_v2 = vadd.f32 %v1403_v63, %v1387_v62  ;;  %v1278_v47 = vmul.f32 %v2972_v27, %v1277_v39  ;;  %vm3181_vm14 = vmor %vm1299_vm11, %vm1300_vm9 }
 0x158   : > { %v1297_v5 = vmul.f32 %v3080_v12, %v1296_v48  ;;  %v1451_v31 = vmul.f32 %v1443_v61, %v3013_v49  ;;  %v1491_v56 = vperm.slane %v3100_v38, 6  ;;  %v1515_v58 = vperm.slane %v3100_v38, 7 }
 0x159   : > { %v1506_v42 = vadd.f32 %v1498_v11, %v1482_v23  ;;  %v1306_v20 = vor.u32 1.1754944e-38, %v1305_v25  ;;  %v1435_v35 = vadd.f32 %v1427_v19, %v1411_v2  ;;  %v1356_v52 = vperm.slane %v1278_v47, 0 }
 0x15a   : > { %v1372_v41 = vperm.slane %v1278_v47, 1  ;;  %vm3152_vm13 = vcmp.eq.f32.partialorder %v1303_v15, 8.507059e+37  ;;  %v1475_v33 = vmul.f32 %v1467_v53, %v3016_v8  ;;  %v1396_v38 = vperm.slane %v1278_v47, 2 }
 0x15b   : > { %v1530_v50 = vadd.f32 %v1522_v4, %v1506_v42  ;;  %v1420_v25 = vperm.slane %v1278_v47, 3  ;;  %v1287_v28 = vsel %vm3148_vm12, %v3056_v21, %v1283_v22  ;;  %v1459_v18 = vadd.f32 %v1451_v31, %v1435_v35 }
 0x15c   : > { %v1364_v26 = vmul.f32 %v1356_v52, %v3029_v55  ;;  %v1380_v45 = vmul.f32 %v1372_v41, %v2999_v43  ;;  %v1298_v34 = vadd.f32 %v3080_v12, %v1297_v5  ;;  %v1499_v14 = vmul.f32 %v1491_v56, %v3019_v60 }
 0x15d   : > { %1538 = vxpose.xlu0.b32.start [1/8] (short) (narrow) %v1530_v50, 8  ;;  %v3163_v15 = vpop.eup %2018  ;;  %v1444_v24 = vperm.slane %v1278_v47, 4  ;;  %v1468_v11 = vperm.slane %v1278_v47, 5  ;;  %v3169_v57 = vadd.f32 %v1221_v40, %v3064_v17  ;;  %v1483_v21 = vadd.f32 %v1475_v33, %v1459_v18 }
 0x15e   : > { %v1523_v51 = vmul.f32 %v1515_v58, %v3026_v30  ;;  %v1388_v16 = vadd.f32 %v1380_v45, %v1364_v26  ;;  %v1404_v37 = vmul.f32 %v1396_v38, %v3005_v29  ;;  %v1428_v59 = vmul.f32 %v1420_v25, %v3002_v44 }
 0x15f   : > { %v1292_v48 = vsel %vm3128_vm10, %v3073_v7, %v1287_v28  ;;  %v1310_v17 = vmul.f32 %v3163_v15, %v3114_v6  ;;  %v1318_v40 = vand.u32 2147483647, %v3114_v6  ;;  %v1507_v61 = vadd.f32 %v1499_v14, %v1483_v21 }
 0x160   : > { %v1412_v53 = vadd.f32 %v1404_v37, %v1388_v16  ;;  %v1293_v23 = vmul.f32 %v2977_v46, %v1292_v48  ;;  %v1302_v7 = vsel %vm3181_vm14, %v3080_v12, %v1298_v34  ;;  %v1452_v62 = vmul.f32 %v1444_v24, %v3013_v49 }
 0x161   : > { %v1476_v3 = vmul.f32 %v1468_v11, %v3016_v8  ;;  %v1492_v63 = vperm.slane %v1278_v47, 6  ;;  %v1516_v0 = vperm.slane %v1278_v47, 7  ;;  %v1531_v10 = vadd.f32 %v1523_v51, %v1507_v61 }
 0x162   : > { %v1436_v19 = vadd.f32 %v1428_v59, %v1412_v53  ;;  %v1357_v39 = vperm.slane %v1293_v23, 0  ;;  %v1373_v22 = vperm.slane %v1293_v23, 1  ;;  %v1397_v42 = vperm.slane %v1293_v23, 2 }
 0x163   : > { %v1421_v2 = vperm.slane %v1293_v23, 3  ;;  %v1307_v5 = vsel %vm3152_vm13, %v1306_v20, %v1302_v7  ;;  %v1311_v46 = vsub.f32 1.0, %v1310_v17  ;;  %v1445_v58 = vperm.slane %v1293_v23, 4 }
 0x164   : > { %v1460_v31 = vadd.f32 %v1452_v62, %v1436_v19  ;;  %v1365_v12 = vmul.f32 %v1357_v39, %v3029_v55  ;;  %v1381_v56 = vmul.f32 %v1373_v22, %v2999_v43  ;;  %v1500_v50 = vmul.f32 %v1492_v63, %v3019_v60 }
 0x165   : > { %1539 = vxpose.xlu0.b32.cont [2/8] (short) (narrow) %v1531_v10, 8  ;;  %v1524_v47 = vmul.f32 %v1516_v0, %v3026_v30  ;;  %vm1314_vm15 = vweird.f32 %v3114_v6  ;;  %vm1315_vm1 = vweird.f32 %v3163_v15  ;;  %v1405_v20 = vmul.f32 %v1397_v42, %v3005_v29 }
 0x166   : > { %v1484_v35 = vadd.f32 %v1476_v3, %v1460_v31  ;;  %v1389_v52 = vadd.f32 %v1381_v56, %v1365_v12  ;;  %v1320_v41 = vand.u32 2147483648, %v3114_v6  ;;  %v1429_v9 = vmul.f32 %v1421_v2, %v3002_v44  ;;  %vm1316_vm3 = vmor %vm1314_vm15, %vm1315_vm1 }
 0x167   : > { %v1469_v27 = vperm.slane %v1293_v23, 5  ;;  %v1493_v33 = vperm.slane %v1293_v23, 6  ;;  %v3206_v38 = vmul.f32 %v2983_v13, %v1307_v5  ;;  %vm3208_vm2 = vcmp.eq.f32.partialorder %v1318_v40, 8.507059e+37 }
 0x168   : > { %v1508_v28 = vadd.f32 %v1500_v50, %v1484_v35  ;;  %v1413_v18 = vadd.f32 %v1405_v20, %v1389_v52  ;;  %v1453_v26 = vmul.f32 %v1445_v58, %v3013_v49  ;;  %v1312_v45 = vmul.f32 %v3163_v15, %v1311_v46 }
 0x169   : > { %v1358_v34 = vperm.slane %v3206_v38, 0  ;;  %v1374_v14 = vperm.slane %v3206_v38, 1  ;;  %v1398_v24 = vperm.slane %v3206_v38, 2  ;;  %v1223_v11 = vrot.slane %v3169_v57, 2 }
 0x16a   : > { %v1532_v13 = vadd.f32 %v1524_v47, %v1508_v28  ;;  %v1437_v21 = vadd.f32 %v1429_v9, %v1413_v18  ;;  %v1517_v51 = vperm.slane %v1293_v23, 7  ;;  %v1152_v16 = vrot.slane %v3068_v54, 1 }
 0x16b   : > { %v1477_v37 = vmul.f32 %v1469_v27, %v3016_v8  ;;  %v1366_v59 = vmul.f32 %v1358_v34, %v3029_v55  ;;  %v1382_v48 = vmul.f32 %v1374_v14, %v2999_v43  ;;  %v1422_v4 = vperm.slane %v3206_v38, 3 }
 0x16c   : > { %v1461_v17 = vadd.f32 %v1453_v26, %v1437_v21  ;;  %v1501_v40 = vmul.f32 %v1493_v33, %v3019_v60  ;;  %v1446_v61 = vperm.slane %v3206_v38, 4  ;;  %v1321_v53 = vor.u32 1.1754944e-38, %v1320_v41 }
 0x16d   : > { %1540 = vxpose.xlu0.b32.cont [3/8] (short) (narrow) %v1532_v13, 8  ;;  %v1390_v7 = vadd.f32 %v1382_v48, %v1366_v59  ;;  %v1406_v23 = vmul.f32 %v1398_v24, %v3005_v29  ;;  %v1313_v62 = vadd.f32 %v3163_v15, %v1312_v45  ;;  %v1224_v3 = vadd.f32 %v1223_v11, %v3169_v57 }
 0x16e   : > { %v1485_v63 = vadd.f32 %v1477_v37, %v1461_v17  ;;  %v1525_v0 = vmul.f32 %v1517_v51, %v3026_v30  ;;  %v1470_v10 = vperm.slane %v3206_v38, 5  ;;  %v1153_v19 = vmax.f32 %v3068_v54, %v1152_v16 }
 0x16f   : > { %v1414_v39 = vadd.f32 %v1406_v23, %v1390_v7  ;;  %v1430_v22 = vmul.f32 %v1422_v4, %v3002_v44  ;;  %v1317_v42 = vsel %vm1316_vm3, %v3163_v15, %v1313_v62  ;;  %v1225_v2 = vrot.slane %v1224_v3, 1 }
 0x170   : > { %v1509_v5 = vadd.f32 %v1501_v40, %v1485_v63  ;;  %v1494_v57 = vperm.slane %v3206_v38, 6  ;;  %v1322_v46 = vsel %vm3208_vm2, %v1321_v53, %v1317_v42  ;;  %v1161_v31 = vsub.f32 %v2979_v1, %v1153_v19 }
 0x171   : > { %v1438_v12 = vadd.f32 %v1430_v22, %v1414_v39  ;;  %v1454_v6 = vmul.f32 %v1446_v61, %v3013_v49  ;;  %v1323_v56 = vmul.f32 %v2993_v32, %v1322_v46  ;;  %v1478_v58 = vmul.f32 %v1470_v10, %v3016_v8 }
 0x172   : > { %v1533_v54 = vadd.f32 %v1525_v0, %v1509_v5  ;;  %v1226_v50 = vadd.f32 %v1225_v2, %v1224_v3  ;;  %v1502_v20 = vmul.f32 %v1494_v57, %v3019_v60  ;;  %v1518_v41 = vperm.slane %v3206_v38, 7 }
 0x173   : > { %v1462_v47 = vadd.f32 %v1454_v6, %v1438_v12  ;;  %v1359_v15 = vperm.slane %v1323_v56, 0  ;;  %v1375_v35 = vperm.slane %v1323_v56, 1  ;;  %v1399_v52 = vperm.slane %v1323_v56, 2 }
 0x174   : > { %v1176_v9 = vmul.f32 1.442695, %v1161_v31  ;;  %v1423_v32 = vperm.slane %v1323_v56, 3  ;;  %v1447_v25 = vperm.slane %v1323_v56, 4  ;;  %2020 = vrcp.f32 %v1226_v50 }
 0x175   : > { %1541 = vxpose.xlu0.b32.cont [4/8] (short) (narrow) %v1533_v54, 8  ;;  %v1486_v1 = vadd.f32 %v1478_v58, %v1462_v47  ;;  %v1367_v27 = vmul.f32 %v1359_v15, %v3029_v55  ;;  %v1383_v33 = vmul.f32 %v1375_v35, %v2999_v43  ;;  %v1407_v26 = vmul.f32 %v1399_v52, %v3005_v29 }
 0x176   : > { %v1526_v45 = vmul.f32 %v1518_v41, %v3026_v30  ;;  %2022 = vpow2.f32 %v1176_v9  ;;  %v1431_v14 = vmul.f32 %v1423_v32, %v3002_v44  ;;  %v1471_v38 = vperm.slane %v1323_v56, 5 }
 0x177   : > { %v1510_v28 = vadd.f32 %v1502_v20, %v1486_v1  ;;  %v1391_v18 = vadd.f32 %v1383_v33, %v1367_v27  ;;  %v1455_v13 = vmul.f32 %v1447_v25, %v3013_v49  ;;  %v1495_v21 = vperm.slane %v1323_v56, 6 }
 0x178   : > { %v1479_v37 = vmul.f32 %v1471_v38, %v3016_v8  ;;  %v1519_v59 = vperm.slane %v1323_v56, 7  ;;  %v1335_v3 = vand.u32 2147483648, %v1226_v50  ;;  %v1333_v0 = vand.u32 2147483647, %v1226_v50 }
 0x179   : > { %v1415_v34 = vadd.f32 %v1407_v26, %v1391_v18  ;;  %v1534_v24 = vadd.f32 %v1526_v45, %v1510_v28  ;;  %v1503_v40 = vmul.f32 %v1495_v21, %v3019_v60  ;;  %vm1329_vm5 = vweird.f32 %v1226_v50  ;;  %v1577_v28 = vld [vmem:[%s3428_s3 + $0x38] sm:$0xff] }
 0x17a   : > { %v2021_v51 = vpop.eup %2020  ;;  %v1527_v62 = vmul.f32 %v1519_v59, %v3026_v30  ;;  %v1336_v42 = vor.u32 1.1754944e-38, %v1335_v3  ;;  %vm1334_vm7 = vcmp.eq.f32.partialorder %v1333_v0, 8.507059e+37  ;;  %1913 = vmatpush.xpose.msk.msrb.mxu1 %vm605_vm0, %v1577_v28  ;;  %v1573_v3 = vld [vmem:[%s3428_s3 + $0x18] sm:$0xff]  ;;  %vm1725_vm13 = vcmask 261120  }
 0x17b   : > { %v1439_v11 = vadd.f32 %v1431_v14, %v1415_v34  ;;  %v1325_v4 = vmul.f32 %v2021_v51, %v1226_v50  ;;  %vm1330_vm4 = vweird.f32 %v2021_v51  ;;  %v1576_v14 = vld [vmem:[%s3428_s3 + $0x30] sm:$0xff] }
 0x17c   : > { %v3253_v48 = vpop.eup %2022  ;;  %vm1331_vm6 = vmor %vm1329_vm5, %vm1330_vm4 }
 0x17d   : > { %1542 = vxpose.xlu0.b32.cont [5/8] (short) (narrow) %v1534_v24, 8  ;;  %v1463_v16 = vadd.f32 %v1455_v13, %v1439_v11  ;;  %v1227_v61 = vsel %vm1097_vm8, %v3253_v48, 0.0  ;;  %v1326_v53 = vsub.f32 1.0, %v1325_v4 }
 0x17e   : > { %v1228_v7 = vrot.slane %v1227_v61, 4  ;;  %1914 = vmatpush.xpose.msk.msrb.mxu1 %vm605_vm0, %v1576_v14  ;;  %v1669_v14 = vld [vmem:[%s3432_s7] sm:$0xff] }
 0x17f   : > { %v1487_v17 = vadd.f32 %v1479_v37, %v1463_v16  ;;  %v1327_v63 = vmul.f32 %v2021_v51, %v1326_v53  ;;  %v1575_v37 = vld [vmem:[%s3428_s3 + $0x28] sm:$0xff] }
 0x180   : > { %v1229_v10 = vadd.f32 %v1228_v7, %v1227_v61 }
 0x181   : > { %v1511_v23 = vadd.f32 %v1503_v40, %v1487_v17  ;;  %v1328_v39 = vadd.f32 %v2021_v51, %v1327_v63  ;;  %v1574_v40 = vld [vmem:[%s3428_s3 + $0x20] sm:$0xff] }
 0x182   : > { %v1230_v22 = vrot.slane %v1229_v10, 2  ;;  %1915 = vmatpush.xpose.msk.msrb.mxu1 %vm605_vm0, %v1575_v37 }
 0x183   : > { %v1535_v19 = vadd.f32 %v1527_v62, %v1511_v23  ;;  %v1332_v2 = vsel %vm1331_vm6, %v2021_v51, %v1328_v39 }
 0x184   : > { %v1231_v5 = vadd.f32 %v1230_v22, %v1229_v10  ;;  %v1337_v57 = vsel %vm1334_vm7, %v1336_v42, %v1332_v2  ;;  %v1572_v22 = vld [vmem:[%s3428_s3 + $0x10] sm:$0xff] }
 0x185   : > { %1543 = vxpose.xlu0.b32.cont [6/8] (short) (narrow) %v1535_v19, 8  ;;  %v1338_v46 = vmul.f32 %v3039_v36, %v1337_v57 }
 0x186   : > { %v1232_v56 = vrot.slane %v1231_v5, 1  ;;  %1916 = vmatpush.xpose.msk.msrb.mxu1 %vm605_vm0, %v1574_v40  ;;  %v1715_v40 = vld [vmem:[%s3434_s9 + $0x10] sm:$0xff] }
 0x187   : > { %v1360_v31 = vperm.slane %v1338_v46, 0  ;;  %v1376_v12 = vperm.slane %v1338_v46, 1  ;;  %v1400_v6 = vperm.slane %v1338_v46, 2  ;;  %v1424_v47 = vperm.slane %v1338_v46, 3 }
 0x188   : > { %v1448_v35 = vperm.slane %v1338_v46, 4  ;;  %v1233_v52 = vadd.f32 %v1232_v56, %v1231_v5  ;;  %v1472_v9 = vperm.slane %v1338_v46, 5  ;;  %v1496_v27 = vperm.slane %v1338_v46, 6  ;;  %v1570_v56 = vld [vmem:[%s3428_s3] sm:$0xff] }
 0x189   : > { %v1368_v54 = vmul.f32 %v1360_v31, %v3029_v55  ;;  %v1384_v58 = vmul.f32 %v1376_v12, %v2999_v43  ;;  %v1408_v15 = vmul.f32 %v1400_v6, %v3005_v29  ;;  %v1432_v41 = vmul.f32 %v1424_v47, %v3002_v44 }
 0x18a   : > { %2024 = vrcp.f32 %v1233_v52  ;;  %v1456_v1 = vmul.f32 %v1448_v35, %v3013_v49  ;;  %v1480_v32 = vmul.f32 %v1472_v9, %v3016_v8  ;;  %v1520_v25 = vperm.slane %v1338_v46, 7  ;;  %1917 = vmatpush.xpose.msk.msrb.mxu1 %vm605_vm0, %v1573_v3  ;;  %v1571_v46 = vld [vmem:[%s3428_s3 + $0x8] sm:$0xff] }
 0x18b   : > { %v1392_v50 = vadd.f32 %v1384_v58, %v1368_v54  ;;  %v1504_v45 = vmul.f32 %v1496_v27, %v3019_v60  ;;  %v1350_v21 = vand.u32 2147483648, %v1233_v52  ;;  %v1348_v16 = vand.u32 2147483647, %v1233_v52 }
 0x18c   : > { %v1528_v24 = vmul.f32 %v1520_v25, %v3026_v30  ;;  %vm1344_vm9 = vweird.f32 %v1233_v52 }
 0x18d   : > { %v1416_v20 = vadd.f32 %v1408_v15, %v1392_v50  ;;  %v1351_v4 = vor.u32 1.1754944e-38, %v1350_v21  ;;  %vm1349_vm11 = vcmp.eq.f32.partialorder %v1348_v16, 8.507059e+37  ;;  %v2032_v15 = vld [vmem:[%s2228_s20] sm:$0xff]  ;;  %s1822_s20 = sshll.u32 %s1818_s16, 4  ;;  %s1823_s20 = int_to_ptr.hbm [resolvable:$true] %s1822_s20 }
 0x18e   : > { %1918 = vmatpush.xpose.msk.msrb.mxu1 %vm605_vm0, %v1572_v22  ;;  %v1717_v16 = vld [vmem:[%s3434_s9 + $0x20] sm:$0xff]  ;;  %s2047_s17 = sshra.s32 %s1823_s20, 4  ;;  %s2048_s17 = int_to_ptr.hbm [resolvable:$true] %s2047_s17 }
 0x18f   : > { %v1440_v36 = vadd.f32 %v1432_v41, %v1416_v20  ;;  %v2098_v20 = vmov 64.0   ;;  %v1671_v41 = vld [vmem:[%s3432_s7 + $0x10] sm:$0xff]  ;;  %s2049_s30 = scalar_lea.hbm %s2048_s17, 8  ;;  %p2054_p0 = scmp.lt.s32.totalorder %s2048_s17, %s3438_s13 }
 0x190   : > { %v2025_v18 = vpop.eup %2024  ;;  %2026 = vrcp.f32 %v2098_v20  ;;  %p2050_p11 = scmp.ne.s32.totalorder %s2048_s17, %s2049_s30  ;;  %p2055_p1 = scmp.lt.s32.totalorder %s2053_s24, %s2049_s30 }
 0x191   : > { %v1464_v33 = vadd.f32 %v1456_v1, %v1440_v36  ;;  %v1340_v34 = vmul.f32 %v2025_v18, %v1233_v52  ;;  %vm1345_vm8 = vweird.f32 %v2025_v18 }
 0x192   : > { %vm1346_vm10 = vmor %vm1344_vm9, %vm1345_vm8  ;;  %1919 = vmatpush.xpose.msk.msrb.mxu1 %vm605_vm0, %v1571_v46  ;;  %p2051_p12 = pnand %p2050_p11, %p2207_p5  ;;  %p2056_p2 = por %p2055_p1, %p2054_p0 }
 0x193   : > { %v1488_v26 = vadd.f32 %v1480_v32, %v1464_v33  ;;  %v1341_v11 = vsub.f32 1.0, %v1340_v34  ;;  %v1670_v34 = vld [vmem:[%s3432_s7 + $0x8] sm:$0xff] }
 0x194   : > { %p2052_p13 = pneg %p2051_p12 }
 0x195   : > { %v1512_v38 = vadd.f32 %v1504_v45, %v1488_v26  ;;  %v1342_v51 = vmul.f32 %v2025_v18, %v1341_v11 }
 0x196   : > { %1920 = vmatpush.xpose.msk.msrb.mxu1 %vm605_vm0, %v1570_v56  ;;  %v2027_v9 = vpop.eup %2026  ;;  %p2057_p3 = pnand %p2056_p2, %p2052_p13 }
 0x197   : > { %v1536_v13 = vadd.f32 %v1528_v24, %v1512_v38  ;;  %v1343_v59 = vadd.f32 %v2025_v18, %v1342_v51  ;;  %v1634_v36 = vmul.f32 64.0, %v2027_v9  ;;  %vm1638_vm12 = vweird.f32 %v2027_v9  ;;  %v1720_v38 = vld [vmem:[%s3434_s9 + $0x38] sm:$0xff]  ;;  %v1719_v24 = vld [vmem:[%s3434_s9 + $0x30] sm:$0xff]  ;;  %v1718_v51 = vld [vmem:[%s3434_s9 + $0x28] sm:$0xff] }
 0x198   : > { %1927 = vmatpush.xpose.msk.msra.mxu3 %vm1725_vm13, %v1720_v38 }
 0x199   : > { %1544 = vxpose.xlu0.b32.cont [7/8] (short) (narrow) %v1536_v13, 8  ;;  %v1347_v17 = vsel %vm1346_vm10, %v2025_v18, %v1343_v59  ;;  %v1635_v1 = vsub.f32 1.0, %v1634_v36  ;;  %v1716_v59 = vld [vmem:[%s3434_s9 + $0x18] sm:$0xff] }
 0x19a   : > { %v1352_v61 = vsel %vm1349_vm11, %v1351_v4, %v1347_v17 }
 0x19b   : > { %v1353_v53 = vmul.f32 %v3253_v48, %v1352_v61  ;;  %v1636_v27 = vmul.f32 %v2027_v9, %v1635_v1 }
 0x19c   : > { %1928 = vmatpush.xpose.msk.msra.mxu3 %vm1725_vm13, %v1719_v24 }
 0x19d   : > { %v1361_v7 = vperm.slane %v1353_v53, 0  ;;  %v1377_v23 = vperm.slane %v1353_v53, 1  ;;  %v1401_v62 = vperm.slane %v1353_v53, 2  ;;  %v1425_v10 = vperm.slane %v1353_v53, 3 }
 0x19e   : > { %v1449_v48 = vperm.slane %v1353_v53, 4  ;;  %v1473_v5 = vperm.slane %v1353_v53, 5  ;;  %v1497_v57 = vperm.slane %v1353_v53, 6  ;;  %v1521_v12 = vperm.slane %v1353_v53, 7 }
 0x19f   : > { %v1369_v63 = vmul.f32 %v1361_v7, %v3029_v55  ;;  %v1385_v0 = vmul.f32 %v1377_v23, %v2999_v43  ;;  %v1409_v39 = vmul.f32 %v1401_v62, %v3005_v29  ;;  %v1433_v2 = vmul.f32 %v1425_v10, %v3002_v44  ;;  %v1714_v7 = vld [vmem:[%s3434_s9 + $0x8] sm:$0xff]  ;;  %v1988_v62 = vld [vmem:[%s3430_s5] ss:$0 sm:$0xff] }
 0x1a0   : > { %v1457_v43 = vmul.f32 %v1449_v48, %v3013_v49  ;;  %v1481_v31 = vmul.f32 %v1473_v5, %v3016_v8  ;;  %v1505_v44 = vmul.f32 %v1497_v57, %v3019_v60  ;;  %v1529_v54 = vmul.f32 %v1521_v12, %v3026_v30  ;;  %v1987_v8 = vld [vmem:[%s3429_s4] ss:$0 sm:$0xff]  ;;  %v1672_v30 = vld [vmem:[%s3432_s7 + $0x18] sm:$0xff]  ;;  %1929 = vmatpush.xpose.msk.msra.mxu3 %vm1725_vm13, %v1718_v51 }
 0x1a1   : > { %v1393_v19 = vadd.f32 %v1385_v0, %v1369_v63  ;;  %1922 = vmatpush.xpose.msk.msrb.mxu2 %vm605_vm0, %v1672_v30  ;;  %v1637_v33 = vadd.f32 %v2027_v9, %v1636_v27  ;;  %v1989_v0 = vld [vmem:[%s3431_s6] ss:$0 sm:$0xff] }
 0x1a2   : > { %v1990_v48 = vld [vmem:[%s3433_s8] ss:$0 sm:$0xff] }
 0x1a3   : > { %v1417_v42 = vadd.f32 %v1409_v39, %v1393_v19  ;;  %v3323_v32 = vsel %vm1638_vm12, %v2027_v9, %v1637_v33  ;;  %v1713_v39 = vld [vmem:[%s3434_s9] sm:$0xff] }
 0x1a4   : > { %1930 = vmatpush.xpose.msk.msra.mxu3 %vm1725_vm13, %v1717_v16  ;;  %v1991_v5 = vld [vmem:[%s3435_s10] ss:$0 sm:$0xff] }
 0x1a5   : > { %v1441_v55 = vadd.f32 %v1433_v2, %v1417_v42  ;;  %1923 = vmatpush.xpose.msk.msrb.mxu2 %vm605_vm0, %v1671_v41  ;;  %v1993_v30 = vld [vmem:[%s3437_s12] ss:$0 sm:$0xff] }
 0x1a7   : > { %v1465_v29 = vadd.f32 %v1457_v43, %v1441_v55 }
 0x1a8   : > { %1931 = vmatpush.xpose.msk.msra.mxu3 %vm1725_vm13, %v1716_v59 }
 0x1a9   : > { %v1489_v6 = vadd.f32 %v1481_v31, %v1465_v29  ;;  %1924 = vmatpush.xpose.msk.msrb.mxu2 %vm605_vm0, %v1670_v34 }
 0x1ab   : > { %v1513_v49 = vadd.f32 %v1505_v44, %v1489_v6 }
 0x1ac   : > { %1932 = vmatpush.xpose.msk.msra.mxu3 %vm1725_vm13, %v1715_v40 }
 0x1ad   : > { %v1537_v58 = vadd.f32 %v1529_v54, %v1513_v49  ;;  %1925 = vmatpush.xpose.msk.msrb.mxu2 %vm605_vm0, %v1669_v14 }
 0x1af   : > { %1545 = vxpose.xlu0.b32.end [8/8] (short) (narrow) %v1537_v58, 8 }
 0x1b0   : > { %1933 = vmatpush.xpose.msk.msra.mxu3 %vm1725_vm13, %v1714_v7 }
 0x1b4   : > { %1934 = vmatpush.xpose.msk.msra.mxu3 %vm1725_vm13, %v1713_v39 }
 0x21b   : > { %v1554_v47 = vpop.trf.xlu0 }
 0x21c   : > { %1921 = vmatmul.msk.f32.vlgmr.msrb.gmra.mxu1 %vm605_vm0, %v1554_v47 }
 0x299   : > { %v1626_v50 = vpop.f32.mrf.mxu1 }
 0x29a   : > { %v1627_v60 = vadd.f32 %v1987_v8, %v1626_v50 }
 0x29c   : > { %v1629_v35 = vadd.f32 %v2032_v15, %v1627_v60 }
 0x29e   : > { %v1630_v52 = vsel %vm605_vm0, %v1629_v35, 0.0 }
 0x29f   : > { %1631 = vadd.xlane.f32.xlu1 %v1630_v52 }
 0x312   : > { %v1632_v25 = vpop.xlane.xlu1 %1631 }
 0x313   : > { %v1640_v28 = vmul.f32 %v3323_v32, %v1632_v25 }
 0x315   : > { %v1641_v18 = vsub.f32 %v1629_v35, %v1640_v28  ;;  %v1992_v35 = vld [vmem:[%s3436_s11] ss:$0 sm:$0xff] }
 0x317   : > { %v1642_v26 = vmul.f32 %v1641_v18, %v1641_v18 }
 0x319   : > { %v1643_v45 = vsel %vm605_vm0, %v1642_v26, 0.0 }
 0x31a   : > { %1644 = vadd.xlane.f32.xlu2 %v1643_v45 }
 0x38d   : > { %v1645_v11 = vpop.xlane.xlu2 %1644 }
 0x38e   : > { %v1646_v13 = vmul.f32 %v1645_v11, %v3323_v32 }
 0x390   : > { %v1647_v21 = vadd.f32 1e-05, %v1646_v13 }
 0x392   : > { %2028 = vrsqrt.f32 %v1647_v21  ;;  %vm1654_vm15 = vweird.f32 %v1647_v21 }
 0x398   : > { %v2029_v37 = vpop.eup %2028 }
 0x399   : > { %v1649_v4 = vmul.f32 %v2029_v37, %v1647_v21  ;;  %vm1655_vm14 = vweird.f32 %v2029_v37 }
 0x39a   : > { %vm1656_vm1 = vmor %vm1654_vm15, %vm1655_vm14 }
 0x39b   : > { %v1650_v17 = vmul.f32 %v2029_v37, %v1649_v4 }
 0x39d   : > { %v1651_v61 = vmul.f32 0.5, %v1650_v17 }
 0x39f   : > { %v1652_v53 = vsub.f32 1.5, %v1651_v61 }
 0x3a1   : > { %v1653_v23 = vmul.f32 %v2029_v37, %v1652_v53 }
 0x3a3   : > { %v1657_v3 = vsel %vm1656_vm1, %v2029_v37, %v1653_v23 }
 0x3a4   : > { %v1658_v63 = vmul.f32 %v1657_v3, %v1641_v18 }
 0x3a6   : > { %v1663_v10 = vmul.f32 %v1988_v62, %v1658_v63 }
 0x3a8   : > { %v1668_v19 = vadd.f32 %v1989_v0, %v1663_v10 }
 0x3aa   : > { %1926 = vmatmul.msk.f32.vlgmr.msrb.gmra.mxu2 %vm605_vm0, %v1668_v19 }
 0x42d   : > { %v1709_v22 = vpop.f32.mrf.mxu2 }
 0x42e   : > { %v1710_v42 = vadd.f32 %v1990_v48, %v1709_v22 }
 0x430   : > { %v1712_v2 = vmax.f32 %v1710_v42, 0.0 }
 0x432   : > { %1935 = vmatmul.msk.f32.vlgmr.msra.gmra.mxu3 %vm1725_vm13, %v1712_v2 }
 0x4b5   : > { %v1770_v55 = vpop.f32.mrf.mxu3 }
 0x4b6   : > { %v1771_v43 = vadd.f32 %v1991_v5, %v1770_v55 }
 0x4b8   : > { %v1773_v57 = vadd.f32 %v1771_v43, %v1668_v19 }
 0x4ba   : > { %v1774_v46 = vsel %vm605_vm0, %v1773_v57, 0.0 }
 0x4bb   : > { %1775 = vadd.xlane.f32.xlu2 %v1774_v46 }
 0x52e   : > { %v1776_v29 = vpop.xlane.xlu2 %1775 }
 0x52f   : > { %v1777_v31 = vmul.f32 %v1776_v29, %v3323_v32 }
 0x531   : > { %v1778_v12 = vsub.f32 %v1773_v57, %v1777_v31 }
 0x533   : > { %v1779_v6 = vmul.f32 %v1778_v12, %v1778_v12 }
 0x535   : > { %v1780_v44 = vsel %vm605_vm0, %v1779_v6, 0.0 }
 0x536   : > { %1781 = vadd.xlane.f32.xlu1 %v1780_v44 }
 0x5a9   : > { %v1782_v56 = vpop.xlane.xlu1 %1781 }
 0x5aa   : > { %v1783_v49 = vmul.f32 %v1782_v56, %v3323_v32 }
 0x5ac   : > { %v1784_v54 = vadd.f32 1e-05, %v1783_v49 }
 0x5ae   : > { %2030 = vrsqrt.f32 %v1784_v54  ;;  %vm1791_vm3 = vweird.f32 %v1784_v54 }
 0x5b4   : > { %v2031_v58 = vpop.eup %2030 }
 0x5b5   : > { %v1786_v47 = vmul.f32 %v2031_v58, %v1784_v54  ;;  %vm1792_vm2 = vweird.f32 %v2031_v58 }
 0x5b6   : > { %vm1793_vm4 = vmor %vm1791_vm3, %vm1792_vm2 }
 0x5b7   : > { %v1787_v8 = vmul.f32 %v2031_v58, %v1786_v47 }
 0x5b9   : > { %v1788_v50 = vmul.f32 0.5, %v1787_v8 }
 0x5bb   : > { %v1789_v60 = vsub.f32 1.5, %v1788_v50 }
 0x5bd   : > { %v1790_v15 = vmul.f32 %v2031_v58, %v1789_v60 }
 0x5bf   : > { %v1794_v52 = vsel %vm1793_vm4, %v2031_v58, %v1790_v15 }
 0x5c0   : > { %v1795_v20 = vmul.f32 %v1794_v52, %v1778_v12 }
 0x5c2   : > { %v1800_v41 = vmul.f32 %v1992_v35, %v1795_v20 }
 0x5c4   : > { %v1805_v9 = vadd.f32 %v1993_v30, %v1800_v41 }
 0x5c6   : > { %1806 = vst.msk [vmem:[%s431_s0] sm:$0xff] %vm605_vm0, %v1805_v9 }
 0x5c7   : > { %2060 = shalt.err (!%p2057_p3)
}
 0x5c8   : > { %1942 = dma.vmem_to_hbm [thread:$0]  (%p2207_p5), %s1821_s29, 128, %s1823_s20, %s1808_s19  }
 0x5c9 PF: > { %p1948_p4 = scmp.ge.s32.totalorder %s2095_s28, 2  ;;  %s1834_s21 = sand.u32 1, %s2083_s25  }
 0x5ca   : > { %s1835_s22 = scalar_lea.sflag [#allocation3], %s1834_s21 }
 0x5cb   : > { %p1945_p7 = pnand %p1948_p4, %p2211_p6 }
 0x5cd   : > { %p1946_p8 = pneg %p1945_p7 }
 0x5cf   : > { %2078 = dma.done.wait (%p1946_p8), %s1835_s22, 128  }
 0x5d0   : > { %2080 = vsyncadd (%p1946_p8), %s1835_s22, 4294967168  ;;  %s3542_s28 = sld [smem:[#allocation6_spill]]  ;;  %s3545_s25 = smov %s2087_s26 }
 0x5d1   : > { %s3543_s0 = sld [smem:[#allocation5_spill]] }
 0x5d2   : > { %s3544_s27 = sld [smem:[#allocation7_spill]] }
 0x5d6   : > { %p23_p9 = scmp.ge.s32.totalorder %s3542_s28, 4  }
 0x5d7   : > { %s3546_s26 = smov %s3543_s0 }
 0x5d8   :  { %25 = sbr.rel (!%p23_p9) target bundleno = 5 (0x5), region = 107 }
 0x5dd   :  { %1841 = vsyncpa [#allocation3], 1 }
 0x5de   :  { %1843 = vsyncpa [#allocation3 + $0x1], 1 }

</bundles_post_ra>
